<compile_context>
chip_gen: v6e
topology: v6e:2x2x1
jax: 0.10.0
libtpu: 0.0.40
codegen_flags: <defaults>
</compile_context>

<pallas_src>
import functools

import jax
import jax.numpy as jnp
from jax.experimental import pallas as pl
from jax.experimental.pallas import tpu as pltpu


def _sublane_chunk(dtype) -> int:
    """Rows per dense sublane group: 8 (f32/i32), 16 (bf16), 32 (int8)."""
    return max(8, 32 // jnp.dtype(dtype).itemsize)


def _pick_tile(L, chunk):
    """Largest multiple of `chunk` that divides L and is <= 256; else full L."""
    hi = (min(256, L) // chunk) * chunk
    for t in range(hi, chunk - 1, -chunk):
        if L % t == 0:
            return t
    return L  # awkward L: full-extent block is still legal (chunking falls back)


def _bert_embed_kernel(vocab_size, tl, n_inflight, chunk,
                       ids_ref,      # (B, L) int32, SMEM (scalar prefetch)
                       tok_hbm_ref,  # (V, E) token table, raw HBM ref (pl.ANY)
                       pos_ref,      # (tl, E) positional tile, VMEM (auto-pipelined)
                       out_ref,      # (1, tl, E) output tile, VMEM
                       tok_buf,      # (tl, E) VMEM scratch for gathered token rows
                       sems):        # (n_inflight,) DMA semaphores
    lt = pl.program_id(0)   # L-tile index (outer grid axis)
    b = pl.program_id(1)    # batch index  (inner grid axis)
    row0 = lt * tl          # first sequence position covered by this tile

    def _clamped_id(r):
        # Clamp instead of erroring (PyTorch nn.Embedding would raise on OOB).
        tid = ids_ref[b, row0 + r]
        return jnp.clip(tid, 0, vocab_size - 1)

    def _start(tok_id, r):
        pltpu.make_async_copy(tok_hbm_ref.at[tok_id],
                              tok_buf.at[r],
                              sems.at[r % n_inflight]).start()

    def _wait(r):
        # Dummy src/dst: .wait() only needs the semaphore and the copy's byte
        # count; every gather is exactly one (E,) row of the same dtype.
        pltpu.make_async_copy(tok_hbm_ref.at[0],
                              tok_buf.at[0],
                              sems.at[r % n_inflight]).wait()

    def _emit_chunk(base):
        # One sublane/lane-dense (chunk, E) add + store, native dtype (no f32
        # detour); hidden under the still-outstanding gather DMAs.
        sl = pl.ds(pl.multiple_of(base, chunk), chunk)
        out_ref[0, sl, :] = (tok_buf[sl, :] + pos_ref[sl, :]).astype(out_ref.dtype)

    n_chunks = tl // chunk
    n_steady = (tl - n_inflight) // chunk   # chunks with refill; rest is drain

    # ---- prime the in-flight window: rows [0, n_inflight) --------------------
    @pl.loop(0, n_inflight)
    def _(r):
        _start(_clamped_id(r), r)

    # ---- steady state: wait row r, refill with row r+W, chunked add/store ----
    if n_steady > 0:
        @pl.loop(0, n_steady)
        def _(c):
            base = pl.multiple_of(c * chunk, chunk)
            # Hoist all SMEM id reads + clamps of this chunk's refill rows
            # above the semaphore waits.
            refill_ids = [_clamped_id(base + n_inflight + j) for j in range(chunk)]
            for j in range(chunk):          # static unroll
                r = base + j
                _wait(r)
                _start(refill_ids[j], r + n_inflight)
            _emit_chunk(base)

    # ---- drain: last n_inflight rows, no refill -------------------------------
    @pl.loop(n_steady, n_chunks)
    def _(c):
        base = pl.multiple_of(c * chunk, chunk)
        for j in range(chunk):              # static unroll
            _wait(base + j)
        _emit_chunk(base)


def bert_embedding(sequence, token_weight, pos_weight, *, tile_l=None, n_inflight=32):
    """Pallas implementation of BERTEmbedding.forward (eval mode).

    sequence:     (B, L)  integer token ids
    token_weight: (V, E)  token embedding table (row 0 = padding row, already zeroed)
    pos_weight:   (max_len, E) positional embedding table
    returns:      (B, L, E) = token_weight[sequence] + pos_weight[None]
    """
    B, L = sequence.shape
    vocab_size, E = token_weight.shape
    max_len, E2 = pos_weight.shape
    assert E == E2
    assert L == max_len, "PyTorch module's sum requires seq_len == max_len"
    # NOTE: E should be a multiple of 128 for unmasked lane-dense stores.

    chunk = _sublane_chunk(token_weight.dtype)
    tl = tile_l if tile_l is not None else _pick_tile(L, chunk)
    assert L % tl == 0, f"tile_l={tl} must divide L={L}"
    if tl % chunk != 0:
        chunk = tl   # awkward shapes: single chunk per tile (correct, less overlap)
    n_lt = L // tl

    # In-flight window: <= tl, multiple of chunk, default 32 (power of two).
    w = min(n_inflight, tl)
    w = max(chunk, (w // chunk) * chunk)

    kernel = functools.partial(_bert_embed_kernel, vocab_size, tl, w, chunk)

    grid_spec = pltpu.PrefetchScalarGridSpec(
        num_scalar_prefetch=1,        # sequence ids land in SMEM, drive the gather
        grid=(n_lt, B),               # B innermost -> pos tile constant across it
        in_specs=[
            # Token table stays in HBM; rows are gathered manually in-kernel.
            pl.BlockSpec(memory_space=pl.ANY),
            # Positional tile: block index depends only on the L-tile axis, so the
            # DMA is skipped while iterating the inner B axis.
            pl.BlockSpec((tl, E), lambda lt, b, ids: (lt, 0)),
        ],
        out_specs=pl.BlockSpec((1, tl, E), lambda lt, b, ids: (b, lt, 0)),
        scratch_shapes=[
            pltpu.VMEM((tl, E), token_weight.dtype),
            pltpu.SemaphoreType.DMA((w,)),
        ],
    )

    return pl.pallas_call(
        kernel,
        out_shape=jax.ShapeDtypeStruct((B, L, E), token_weight.dtype),
        grid_spec=grid_spec,
        compiler_params=pltpu.CompilerParams(
            # Both axes are independent work: lets v7x shard the grid across its two
            # TensorCores (doubles aggregate DMA-issue rate); harmless on v5e/v6e.
            dimension_semantics=("parallel", "parallel")),
    )(sequence.astype(jnp.int32), token_weight, pos_weight)


if __name__ == "__main__":
    # Small deterministic setup consistent with the module's __init__.
    vocab_size = 384
    embed_size = 128     # lane-dense last dim (multiple of 128)
    max_len = 128        # exercises prime + steady-state + drain phases
    batch = 2
    seq_len = max_len    # required by the PyTorch forward's broadcast-by-sum

    key = jax.random.PRNGKey(0)
    k_tok, k_pos, k_seq = jax.random.split(key, 3)

    # nn.Embedding default init ~ N(0, 1); padding_idx=0 zeroes row 0.
    token_weight = jax.random.normal(k_tok, (vocab_size, embed_size), dtype=jnp.float32)
    token_weight = token_weight.at[0].set(0.0)
    pos_weight = jax.random.normal(k_pos, (max_len, embed_size), dtype=jnp.float32)

    sequence = jax.random.randint(k_seq, (batch, seq_len), 0, vocab_size, dtype=jnp.int32)

    out = jax.block_until_ready(bert_embedding(sequence, token_weight, pos_weight))

    # Pure-JAX reference (eval-mode dropout == identity).
    ref = token_weight[sequence] + pos_weight[None, :, :]
    assert out.shape == (batch, seq_len, embed_size)
    assert jnp.allclose(out, ref, atol=1e-6), "mismatch vs reference"

    print("KERNEL_OK")
</pallas_src>

<mosaic_0001>
module attributes {stable_mosaic.version = 11 : i64} {
  func.func @_bert_embed_kernel(%arg0: i32, %arg1: i32, %arg2: memref<2x128xi32, #tpu.memory_space<smem>>, %arg3: memref<384x128xf32, #tpu.memory_space<any>>, %arg4: memref<128x128xf32, #tpu.memory_space<vmem>>, %arg5: memref<1x128x128xf32, #tpu.memory_space<vmem>>, %arg6: memref<128x128xf32, #tpu.memory_space<vmem>>, %arg7: memref<32x!tpu.dma_semaphore, #tpu.memory_space<semaphore_mem>>) attributes {dimension_semantics = [#tpu.dimension_semantics<parallel>, #tpu.dimension_semantics<parallel>], iteration_bounds = array<i64: 1, 2>, scalar_prefetch = 1 : i64, scratch_operands = 2 : i64, tpu.core_type = #tpu.core_type<tc>, window_params = [{}, {transform_indices = @transform_1, window_bounds = array<i64: 128, 128>}, {transform_indices = @transform_2, window_bounds = array<i64: 1, 128, 128>}]} {
    %c128_i32 = arith.constant 128 : i32
    %0 = arith.muli %arg0, %c128_i32 : i32
    %c0_i32 = arith.constant 0 : i32
    %c32_i32 = arith.constant 32 : i32
    %1 = arith.addi %c0_i32, %c32_i32 : i32
    %c1_i32 = arith.constant 1 : i32
    scf.for %arg8 = %c0_i32 to %1 step %c1_i32  : i32 {
      %c1_i32_7 = arith.constant 1 : i32
      %4 = arith.muli %arg8, %c1_i32_7 : i32
      %c0_i32_8 = arith.constant 0 : i32
      %5 = arith.addi %c0_i32_8, %4 : i32
      %6 = arith.addi %0, %5 : i32
      %7 = arith.index_cast %arg1 : i32 to index
      %8 = arith.index_cast %6 : i32 to index
      %9 = memref.load %arg2[%7, %8] : memref<2x128xi32, #tpu.memory_space<smem>>
      %c0_i32_9 = arith.constant 0 : i32
      %c383_i32 = arith.constant 383 : i32
      %10 = arith.maxsi %c0_i32_9, %9 : i32
      %11 = arith.minsi %c383_i32, %10 : i32
      %c32_i32_10 = arith.constant 32 : i32
      %c0_i32_11 = arith.constant 0 : i32
      %12 = arith.cmpi eq, %c32_i32_10, %c0_i32_11 : i32
      %c1_i32_12 = arith.constant 1 : i32
      %13 = arith.select %12, %c1_i32_12, %c32_i32_10 : i32
      %14 = arith.remsi %5, %13 : i32
      %c0_i32_13 = arith.constant 0 : i32
      %15 = arith.cmpi ne, %14, %c0_i32_13 : i32
      %c0_i32_14 = arith.constant 0 : i32
      %16 = arith.cmpi slt, %14, %c0_i32_14 : i32
      %c0_i32_15 = arith.constant 0 : i32
      %17 = arith.cmpi slt, %13, %c0_i32_15 : i32
      %18 = arith.xori %16, %17 : i1
      %19 = arith.andi %18, %15 : i1
      %20 = arith.addi %14, %13 : i32
      %21 = arith.select %19, %20, %14 : i32
      %c0_i32_16 = arith.constant 0 : i32
      %22 = tpu.memref_slice %arg3[%11, %c0_i32_16] : memref<384x128xf32, #tpu.memory_space<any>> -> memref<1x128xf32, #tpu.memory_space<any>>
      %23 = tpu.memref_squeeze %22 : memref<1x128xf32, #tpu.memory_space<any>> -> memref<128xf32, #tpu.memory_space<any>>
      %c0_i32_17 = arith.constant 0 : i32
      %24 = tpu.memref_slice %arg6[%5, %c0_i32_17] : memref<128x128xf32, #tpu.memory_space<vmem>> -> memref<1x128xf32, #tpu.memory_space<vmem>>
      %25 = tpu.memref_squeeze %24 : memref<1x128xf32, #tpu.memory_space<vmem>> -> memref<128xf32, #tpu.memory_space<vmem>>
      %26 = tpu.memref_slice %arg7[%21] : memref<32x!tpu.dma_semaphore, #tpu.memory_space<semaphore_mem>> -> memref<1x!tpu.dma_semaphore, #tpu.memory_space<semaphore_mem>>
      %27 = tpu.memref_squeeze %26 : memref<1x!tpu.dma_semaphore, #tpu.memory_space<semaphore_mem>> -> memref<!tpu.dma_semaphore, #tpu.memory_space<semaphore_mem>>
      tpu.enqueue_dma source(%23 : memref<128xf32, #tpu.memory_space<any>>) target(%25 : memref<128xf32, #tpu.memory_space<vmem>>) target_semaphore(%27 : memref<!tpu.dma_semaphore, #tpu.memory_space<semaphore_mem>>)
    }
    %c32_i32_0 = arith.constant 32 : i32
    %c0_i32_1 = arith.constant 0 : i32
    %c12_i32 = arith.constant 12 : i32
    %2 = arith.addi %c0_i32_1, %c12_i32 : i32
    %c1_i32_2 = arith.constant 1 : i32
    scf.for %arg8 = %c0_i32_1 to %2 step %c1_i32_2  : i32 {
      %c1_i32_7 = arith.constant 1 : i32
      %4 = arith.muli %arg8, %c1_i32_7 : i32
      %c0_i32_8 = arith.constant 0 : i32
      %5 = arith.addi %c0_i32_8, %4 : i32
      %c8_i32 = arith.constant 8 : i32
      %6 = arith.muli %5, %c8_i32 : i32
      %7 = tpu.assume_multiple %6, 8 : i32
      %c32_i32_9 = arith.constant 32 : i32
      %8 = arith.addi %7, %c32_i32_9 : i32
      %c0_i32_10 = arith.constant 0 : i32
      %9 = arith.addi %8, %c0_i32_10 : i32
      %10 = arith.addi %0, %9 : i32
      %11 = arith.index_cast %arg1 : i32 to index
      %12 = arith.index_cast %10 : i32 to index
      %13 = memref.load %arg2[%11, %12] : memref<2x128xi32, #tpu.memory_space<smem>>
      %c0_i32_11 = arith.constant 0 : i32
      %c383_i32 = arith.constant 383 : i32
      %14 = arith.maxsi %c0_i32_11, %13 : i32
      %15 = arith.minsi %c383_i32, %14 : i32
      %c32_i32_12 = arith.constant 32 : i32
      %16 = arith.addi %7, %c32_i32_12 : i32
      %c1_i32_13 = arith.constant 1 : i32
      %17 = arith.addi %16, %c1_i32_13 : i32
      %18 = arith.addi %0, %17 : i32
      %19 = arith.index_cast %arg1 : i32 to index
      %20 = arith.index_cast %18 : i32 to index
      %21 = memref.load %arg2[%19, %20] : memref<2x128xi32, #tpu.memory_space<smem>>
      %c0_i32_14 = arith.constant 0 : i32
      %c383_i32_15 = arith.constant 383 : i32
      %22 = arith.maxsi %c0_i32_14, %21 : i32
      %23 = arith.minsi %c383_i32_15, %22 : i32
      %c32_i32_16 = arith.constant 32 : i32
      %24 = arith.addi %7, %c32_i32_16 : i32
      %c2_i32 = arith.constant 2 : i32
      %25 = arith.addi %24, %c2_i32 : i32
      %26 = arith.addi %0, %25 : i32
      %27 = arith.index_cast %arg1 : i32 to index
      %28 = arith.index_cast %26 : i32 to index
      %29 = memref.load %arg2[%27, %28] : memref<2x128xi32, #tpu.memory_space<smem>>
      %c0_i32_17 = arith.constant 0 : i32
      %c383_i32_18 = arith.constant 383 : i32
      %30 = arith.maxsi %c0_i32_17, %29 : i32
      %31 = arith.minsi %c383_i32_18, %30 : i32
      %c32_i32_19 = arith.constant 32 : i32
      %32 = arith.addi %7, %c32_i32_19 : i32
      %c3_i32 = arith.constant 3 : i32
      %33 = arith.addi %32, %c3_i32 : i32
      %34 = arith.addi %0, %33 : i32
      %35 = arith.index_cast %arg1 : i32 to index
      %36 = arith.index_cast %34 : i32 to index
      %37 = memref.load %arg2[%35, %36] : memref<2x128xi32, #tpu.memory_space<smem>>
      %c0_i32_20 = arith.constant 0 : i32
      %c383_i32_21 = arith.constant 383 : i32
      %38 = arith.maxsi %c0_i32_20, %37 : i32
      %39 = arith.minsi %c383_i32_21, %38 : i32
      %c32_i32_22 = arith.constant 32 : i32
      %40 = arith.addi %7, %c32_i32_22 : i32
      %c4_i32_23 = arith.constant 4 : i32
      %41 = arith.addi %40, %c4_i32_23 : i32
      %42 = arith.addi %0, %41 : i32
      %43 = arith.index_cast %arg1 : i32 to index
      %44 = arith.index_cast %42 : i32 to index
      %45 = memref.load %arg2[%43, %44] : memref<2x128xi32, #tpu.memory_space<smem>>
      %c0_i32_24 = arith.constant 0 : i32
      %c383_i32_25 = arith.constant 383 : i32
      %46 = arith.maxsi %c0_i32_24, %45 : i32
      %47 = arith.minsi %c383_i32_25, %46 : i32
      %c32_i32_26 = arith.constant 32 : i32
      %48 = arith.addi %7, %c32_i32_26 : i32
      %c5_i32 = arith.constant 5 : i32
      %49 = arith.addi %48, %c5_i32 : i32
      %50 = arith.addi %0, %49 : i32
      %51 = arith.index_cast %arg1 : i32 to index
      %52 = arith.index_cast %50 : i32 to index
      %53 = memref.load %arg2[%51, %52] : memref<2x128xi32, #tpu.memory_space<smem>>
      %c0_i32_27 = arith.constant 0 : i32
      %c383_i32_28 = arith.constant 383 : i32
      %54 = arith.maxsi %c0_i32_27, %53 : i32
      %55 = arith.minsi %c383_i32_28, %54 : i32
      %c32_i32_29 = arith.constant 32 : i32
      %56 = arith.addi %7, %c32_i32_29 : i32
      %c6_i32 = arith.constant 6 : i32
      %57 = arith.addi %56, %c6_i32 : i32
      %58 = arith.addi %0, %57 : i32
      %59 = arith.index_cast %arg1 : i32 to index
      %60 = arith.index_cast %58 : i32 to index
      %61 = memref.load %arg2[%59, %60] : memref<2x128xi32, #tpu.memory_space<smem>>
      %c0_i32_30 = arith.constant 0 : i32
      %c383_i32_31 = arith.constant 383 : i32
      %62 = arith.maxsi %c0_i32_30, %61 : i32
      %63 = arith.minsi %c383_i32_31, %62 : i32
      %c32_i32_32 = arith.constant 32 : i32
      %64 = arith.addi %7, %c32_i32_32 : i32
      %c7_i32 = arith.constant 7 : i32
      %65 = arith.addi %64, %c7_i32 : i32
      %66 = arith.addi %0, %65 : i32
      %67 = arith.index_cast %arg1 : i32 to index
      %68 = arith.index_cast %66 : i32 to index
      %69 = memref.load %arg2[%67, %68] : memref<2x128xi32, #tpu.memory_space<smem>>
      %c0_i32_33 = arith.constant 0 : i32
      %c383_i32_34 = arith.constant 383 : i32
      %70 = arith.maxsi %c0_i32_33, %69 : i32
      %71 = arith.minsi %c383_i32_34, %70 : i32
      %c0_i32_35 = arith.constant 0 : i32
      %72 = arith.addi %7, %c0_i32_35 : i32
      %c32_i32_36 = arith.constant 32 : i32
      %c0_i32_37 = arith.constant 0 : i32
      %73 = arith.cmpi eq, %c32_i32_36, %c0_i32_37 : i32
      %c1_i32_38 = arith.constant 1 : i32
      %74 = arith.select %73, %c1_i32_38, %c32_i32_36 : i32
      %75 = arith.remsi %72, %74 : i32
      %c0_i32_39 = arith.constant 0 : i32
      %76 = arith.cmpi ne, %75, %c0_i32_39 : i32
      %c0_i32_40 = arith.constant 0 : i32
      %77 = arith.cmpi slt, %75, %c0_i32_40 : i32
      %c0_i32_41 = arith.constant 0 : i32
      %78 = arith.cmpi slt, %74, %c0_i32_41 : i32
      %79 = arith.xori %77, %78 : i1
      %80 = arith.andi %79, %76 : i1
      %81 = arith.addi %75, %74 : i32
      %82 = arith.select %80, %81, %75 : i32
      %c0_i32_42 = arith.constant 0 : i32
      %c0_i32_43 = arith.constant 0 : i32
      %c0_i32_44 = arith.constant 0 : i32
      %83 = tpu.memref_slice %arg3[%c0_i32_42, %c0_i32_44] : memref<384x128xf32, #tpu.memory_space<any>> -> memref<1x128xf32, #tpu.memory_space<any>>
      %84 = tpu.memref_squeeze %83 : memref<1x128xf32, #tpu.memory_space<any>> -> memref<128xf32, #tpu.memory_space<any>>
      %c0_i32_45 = arith.constant 0 : i32
      %85 = tpu.memref_slice %arg6[%c0_i32_43, %c0_i32_45] : memref<128x128xf32, #tpu.memory_space<vmem>> -> memref<1x128xf32, #tpu.memory_space<vmem>>
      %86 = tpu.memref_squeeze %85 : memref<1x128xf32, #tpu.memory_space<vmem>> -> memref<128xf32, #tpu.memory_space<vmem>>
      %87 = tpu.memref_slice %arg7[%82] : memref<32x!tpu.dma_semaphore, #tpu.memory_space<semaphore_mem>> -> memref<1x!tpu.dma_semaphore, #tpu.memory_space<semaphore_mem>>
      %88 = tpu.memref_squeeze %87 : memref<1x!tpu.dma_semaphore, #tpu.memory_space<semaphore_mem>> -> memref<!tpu.dma_semaphore, #tpu.memory_space<semaphore_mem>>
      tpu.wait_dma2 semaphore(%88 : memref<!tpu.dma_semaphore, #tpu.memory_space<semaphore_mem>>) src(%84 : memref<128xf32, #tpu.memory_space<any>>) dst(%86 : memref<128xf32, #tpu.memory_space<vmem>>)
      %c32_i32_46 = arith.constant 32 : i32
      %89 = arith.addi %72, %c32_i32_46 : i32
      %c32_i32_47 = arith.constant 32 : i32
      %c0_i32_48 = arith.constant 0 : i32
      %90 = arith.cmpi eq, %c32_i32_47, %c0_i32_48 : i32
      %c1_i32_49 = arith.constant 1 : i32
      %91 = arith.select %90, %c1_i32_49, %c32_i32_47 : i32
      %92 = arith.remsi %89, %91 : i32
      %c0_i32_50 = arith.constant 0 : i32
      %93 = arith.cmpi ne, %92, %c0_i32_50 : i32
      %c0_i32_51 = arith.constant 0 : i32
      %94 = arith.cmpi slt, %92, %c0_i32_51 : i32
      %c0_i32_52 = arith.constant 0 : i32
      %95 = arith.cmpi slt, %91, %c0_i32_52 : i32
      %96 = arith.xori %94, %95 : i1
      %97 = arith.andi %96, %93 : i1
      %98 = arith.addi %92, %91 : i32
      %99 = arith.select %97, %98, %92 : i32
      %c0_i32_53 = arith.constant 0 : i32
      %100 = tpu.memref_slice %arg3[%15, %c0_i32_53] : memref<384x128xf32, #tpu.memory_space<any>> -> memref<1x128xf32, #tpu.memory_space<any>>
      %101 = tpu.memref_squeeze %100 : memref<1x128xf32, #tpu.memory_space<any>> -> memref<128xf32, #tpu.memory_space<any>>
      %c0_i32_54 = arith.constant 0 : i32
      %102 = tpu.memref_slice %arg6[%89, %c0_i32_54] : memref<128x128xf32, #tpu.memory_space<vmem>> -> memref<1x128xf32, #tpu.memory_space<vmem>>
      %103 = tpu.memref_squeeze %102 : memref<1x128xf32, #tpu.memory_space<vmem>> -> memref<128xf32, #tpu.memory_space<vmem>>
      %104 = tpu.memref_slice %arg7[%99] : memref<32x!tpu.dma_semaphore, #tpu.memory_space<semaphore_mem>> -> memref<1x!tpu.dma_semaphore, #tpu.memory_space<semaphore_mem>>
      %105 = tpu.memref_squeeze %104 : memref<1x!tpu.dma_semaphore, #tpu.memory_space<semaphore_mem>> -> memref<!tpu.dma_semaphore, #tpu.memory_space<semaphore_mem>>
      tpu.enqueue_dma source(%101 : memref<128xf32, #tpu.memory_space<any>>) target(%103 : memref<128xf32, #tpu.memory_space<vmem>>) target_semaphore(%105 : memref<!tpu.dma_semaphore, #tpu.memory_space<semaphore_mem>>)
      %c1_i32_55 = arith.constant 1 : i32
      %106 = arith.addi %7, %c1_i32_55 : i32
      %c32_i32_56 = arith.constant 32 : i32
      %c0_i32_57 = arith.constant 0 : i32
      %107 = arith.cmpi eq, %c32_i32_56, %c0_i32_57 : i32
      %c1_i32_58 = arith.constant 1 : i32
      %108 = arith.select %107, %c1_i32_58, %c32_i32_56 : i32
      %109 = arith.remsi %106, %108 : i32
      %c0_i32_59 = arith.constant 0 : i32
      %110 = arith.cmpi ne, %109, %c0_i32_59 : i32
      %c0_i32_60 = arith.constant 0 : i32
      %111 = arith.cmpi slt, %109, %c0_i32_60 : i32
      %c0_i32_61 = arith.constant 0 : i32
      %112 = arith.cmpi slt, %108, %c0_i32_61 : i32
      %113 = arith.xori %111, %112 : i1
      %114 = arith.andi %113, %110 : i1
      %115 = arith.addi %109, %108 : i32
      %116 = arith.select %114, %115, %109 : i32
      %c0_i32_62 = arith.constant 0 : i32
      %c0_i32_63 = arith.constant 0 : i32
      %c0_i32_64 = arith.constant 0 : i32
      %117 = tpu.memref_slice %arg3[%c0_i32_62, %c0_i32_64] : memref<384x128xf32, #tpu.memory_space<any>> -> memref<1x128xf32, #tpu.memory_space<any>>
      %118 = tpu.memref_squeeze %117 : memref<1x128xf32, #tpu.memory_space<any>> -> memref<128xf32, #tpu.memory_space<any>>
      %c0_i32_65 = arith.constant 0 : i32
      %119 = tpu.memref_slice %arg6[%c0_i32_63, %c0_i32_65] : memref<128x128xf32, #tpu.memory_space<vmem>> -> memref<1x128xf32, #tpu.memory_space<vmem>>
      %120 = tpu.memref_squeeze %119 : memref<1x128xf32, #tpu.memory_space<vmem>> -> memref<128xf32, #tpu.memory_space<vmem>>
      %121 = tpu.memref_slice %arg7[%116] : memref<32x!tpu.dma_semaphore, #tpu.memory_space<semaphore_mem>> -> memref<1x!tpu.dma_semaphore, #tpu.memory_space<semaphore_mem>>
      %122 = tpu.memref_squeeze %121 : memref<1x!tpu.dma_semaphore, #tpu.memory_space<semaphore_mem>> -> memref<!tpu.dma_semaphore, #tpu.memory_space<semaphore_mem>>
      tpu.wait_dma2 semaphore(%122 : memref<!tpu.dma_semaphore, #tpu.memory_space<semaphore_mem>>) src(%118 : memref<128xf32, #tpu.memory_space<any>>) dst(%120 : memref<128xf32, #tpu.memory_space<vmem>>)
      %c32_i32_66 = arith.constant 32 : i32
      %123 = arith.addi %106, %c32_i32_66 : i32
      %c32_i32_67 = arith.constant 32 : i32
      %c0_i32_68 = arith.constant 0 : i32
      %124 = arith.cmpi eq, %c32_i32_67, %c0_i32_68 : i32
      %c1_i32_69 = arith.constant 1 : i32
      %125 = arith.select %124, %c1_i32_69, %c32_i32_67 : i32
      %126 = arith.remsi %123, %125 : i32
      %c0_i32_70 = arith.constant 0 : i32
      %127 = arith.cmpi ne, %126, %c0_i32_70 : i32
      %c0_i32_71 = arith.constant 0 : i32
      %128 = arith.cmpi slt, %126, %c0_i32_71 : i32
      %c0_i32_72 = arith.constant 0 : i32
      %129 = arith.cmpi slt, %125, %c0_i32_72 : i32
      %130 = arith.xori %128, %129 : i1
      %131 = arith.andi %130, %127 : i1
      %132 = arith.addi %126, %125 : i32
      %133 = arith.select %131, %132, %126 : i32
      %c0_i32_73 = arith.constant 0 : i32
      %134 = tpu.memref_slice %arg3[%23, %c0_i32_73] : memref<384x128xf32, #tpu.memory_space<any>> -> memref<1x128xf32, #tpu.memory_space<any>>
      %135 = tpu.memref_squeeze %134 : memref<1x128xf32, #tpu.memory_space<any>> -> memref<128xf32, #tpu.memory_space<any>>
      %c0_i32_74 = arith.constant 0 : i32
      %136 = tpu.memref_slice %arg6[%123, %c0_i32_74] : memref<128x128xf32, #tpu.memory_space<vmem>> -> memref<1x128xf32, #tpu.memory_space<vmem>>
      %137 = tpu.memref_squeeze %136 : memref<1x128xf32, #tpu.memory_space<vmem>> -> memref<128xf32, #tpu.memory_space<vmem>>
      %138 = tpu.memref_slice %arg7[%133] : memref<32x!tpu.dma_semaphore, #tpu.memory_space<semaphore_mem>> -> memref<1x!tpu.dma_semaphore, #tpu.memory_space<semaphore_mem>>
      %139 = tpu.memref_squeeze %138 : memref<1x!tpu.dma_semaphore, #tpu.memory_space<semaphore_mem>> -> memref<!tpu.dma_semaphore, #tpu.memory_space<semaphore_mem>>
      tpu.enqueue_dma source(%135 : memref<128xf32, #tpu.memory_space<any>>) target(%137 : memref<128xf32, #tpu.memory_space<vmem>>) target_semaphore(%139 : memref<!tpu.dma_semaphore, #tpu.memory_space<semaphore_mem>>)
      %c2_i32_75 = arith.constant 2 : i32
      %140 = arith.addi %7, %c2_i32_75 : i32
      %c32_i32_76 = arith.constant 32 : i32
      %c0_i32_77 = arith.constant 0 : i32
      %141 = arith.cmpi eq, %c32_i32_76, %c0_i32_77 : i32
      %c1_i32_78 = arith.constant 1 : i32
      %142 = arith.select %141, %c1_i32_78, %c32_i32_76 : i32
      %143 = arith.remsi %140, %142 : i32
      %c0_i32_79 = arith.constant 0 : i32
      %144 = arith.cmpi ne, %143, %c0_i32_79 : i32
      %c0_i32_80 = arith.constant 0 : i32
      %145 = arith.cmpi slt, %143, %c0_i32_80 : i32
      %c0_i32_81 = arith.constant 0 : i32
      %146 = arith.cmpi slt, %142, %c0_i32_81 : i32
      %147 = arith.xori %145, %146 : i1
      %148 = arith.andi %147, %144 : i1
      %149 = arith.addi %143, %142 : i32
      %150 = arith.select %148, %149, %143 : i32
      %c0_i32_82 = arith.constant 0 : i32
      %c0_i32_83 = arith.constant 0 : i32
      %c0_i32_84 = arith.constant 0 : i32
      %151 = tpu.memref_slice %arg3[%c0_i32_82, %c0_i32_84] : memref<384x128xf32, #tpu.memory_space<any>> -> memref<1x128xf32, #tpu.memory_space<any>>
      %152 = tpu.memref_squeeze %151 : memref<1x128xf32, #tpu.memory_space<any>> -> memref<128xf32, #tpu.memory_space<any>>
      %c0_i32_85 = arith.constant 0 : i32
      %153 = tpu.memref_slice %arg6[%c0_i32_83, %c0_i32_85] : memref<128x128xf32, #tpu.memory_space<vmem>> -> memref<1x128xf32, #tpu.memory_space<vmem>>
      %154 = tpu.memref_squeeze %153 : memref<1x128xf32, #tpu.memory_space<vmem>> -> memref<128xf32, #tpu.memory_space<vmem>>
      %155 = tpu.memref_slice %arg7[%150] : memref<32x!tpu.dma_semaphore, #tpu.memory_space<semaphore_mem>> -> memref<1x!tpu.dma_semaphore, #tpu.memory_space<semaphore_mem>>
      %156 = tpu.memref_squeeze %155 : memref<1x!tpu.dma_semaphore, #tpu.memory_space<semaphore_mem>> -> memref<!tpu.dma_semaphore, #tpu.memory_space<semaphore_mem>>
      tpu.wait_dma2 semaphore(%156 : memref<!tpu.dma_semaphore, #tpu.memory_space<semaphore_mem>>) src(%152 : memref<128xf32, #tpu.memory_space<any>>) dst(%154 : memref<128xf32, #tpu.memory_space<vmem>>)
      %c32_i32_86 = arith.constant 32 : i32
      %157 = arith.addi %140, %c32_i32_86 : i32
      %c32_i32_87 = arith.constant 32 : i32
      %c0_i32_88 = arith.constant 0 : i32
      %158 = arith.cmpi eq, %c32_i32_87, %c0_i32_88 : i32
      %c1_i32_89 = arith.constant 1 : i32
      %159 = arith.select %158, %c1_i32_89, %c32_i32_87 : i32
      %160 = arith.remsi %157, %159 : i32
      %c0_i32_90 = arith.constant 0 : i32
      %161 = arith.cmpi ne, %160, %c0_i32_90 : i32
      %c0_i32_91 = arith.constant 0 : i32
      %162 = arith.cmpi slt, %160, %c0_i32_91 : i32
      %c0_i32_92 = arith.constant 0 : i32
      %163 = arith.cmpi slt, %159, %c0_i32_92 : i32
      %164 = arith.xori %162, %163 : i1
      %165 = arith.andi %164, %161 : i1
      %166 = arith.addi %160, %159 : i32
      %167 = arith.select %165, %166, %160 : i32
      %c0_i32_93 = arith.constant 0 : i32
      %168 = tpu.memref_slice %arg3[%31, %c0_i32_93] : memref<384x128xf32, #tpu.memory_space<any>> -> memref<1x128xf32, #tpu.memory_space<any>>
      %169 = tpu.memref_squeeze %168 : memref<1x128xf32, #tpu.memory_space<any>> -> memref<128xf32, #tpu.memory_space<any>>
      %c0_i32_94 = arith.constant 0 : i32
      %170 = tpu.memref_slice %arg6[%157, %c0_i32_94] : memref<128x128xf32, #tpu.memory_space<vmem>> -> memref<1x128xf32, #tpu.memory_space<vmem>>
      %171 = tpu.memref_squeeze %170 : memref<1x128xf32, #tpu.memory_space<vmem>> -> memref<128xf32, #tpu.memory_space<vmem>>
      %172 = tpu.memref_slice %arg7[%167] : memref<32x!tpu.dma_semaphore, #tpu.memory_space<semaphore_mem>> -> memref<1x!tpu.dma_semaphore, #tpu.memory_space<semaphore_mem>>
      %173 = tpu.memref_squeeze %172 : memref<1x!tpu.dma_semaphore, #tpu.memory_space<semaphore_mem>> -> memref<!tpu.dma_semaphore, #tpu.memory_space<semaphore_mem>>
      tpu.enqueue_dma source(%169 : memref<128xf32, #tpu.memory_space<any>>) target(%171 : memref<128xf32, #tpu.memory_space<vmem>>) target_semaphore(%173 : memref<!tpu.dma_semaphore, #tpu.memory_space<semaphore_mem>>)
      %c3_i32_95 = arith.constant 3 : i32
      %174 = arith.addi %7, %c3_i32_95 : i32
      %c32_i32_96 = arith.constant 32 : i32
      %c0_i32_97 = arith.constant 0 : i32
      %175 = arith.cmpi eq, %c32_i32_96, %c0_i32_97 : i32
      %c1_i32_98 = arith.constant 1 : i32
      %176 = arith.select %175, %c1_i32_98, %c32_i32_96 : i32
      %177 = arith.remsi %174, %176 : i32
      %c0_i32_99 = arith.constant 0 : i32
      %178 = arith.cmpi ne, %177, %c0_i32_99 : i32
      %c0_i32_100 = arith.constant 0 : i32
      %179 = arith.cmpi slt, %177, %c0_i32_100 : i32
      %c0_i32_101 = arith.constant 0 : i32
      %180 = arith.cmpi slt, %176, %c0_i32_101 : i32
      %181 = arith.xori %179, %180 : i1
      %182 = arith.andi %181, %178 : i1
      %183 = arith.addi %177, %176 : i32
      %184 = arith.select %182, %183, %177 : i32
      %c0_i32_102 = arith.constant 0 : i32
      %c0_i32_103 = arith.constant 0 : i32
      %c0_i32_104 = arith.constant 0 : i32
      %185 = tpu.memref_slice %arg3[%c0_i32_102, %c0_i32_104] : memref<384x128xf32, #tpu.memory_space<any>> -> memref<1x128xf32, #tpu.memory_space<any>>
      %186 = tpu.memref_squeeze %185 : memref<1x128xf32, #tpu.memory_space<any>> -> memref<128xf32, #tpu.memory_space<any>>
      %c0_i32_105 = arith.constant 0 : i32
      %187 = tpu.memref_slice %arg6[%c0_i32_103, %c0_i32_105] : memref<128x128xf32, #tpu.memory_space<vmem>> -> memref<1x128xf32, #tpu.memory_space<vmem>>
      %188 = tpu.memref_squeeze %187 : memref<1x128xf32, #tpu.memory_space<vmem>> -> memref<128xf32, #tpu.memory_space<vmem>>
      %189 = tpu.memref_slice %arg7[%184] : memref<32x!tpu.dma_semaphore, #tpu.memory_space<semaphore_mem>> -> memref<1x!tpu.dma_semaphore, #tpu.memory_space<semaphore_mem>>
      %190 = tpu.memref_squeeze %189 : memref<1x!tpu.dma_semaphore, #tpu.memory_space<semaphore_mem>> -> memref<!tpu.dma_semaphore, #tpu.memory_space<semaphore_mem>>
      tpu.wait_dma2 semaphore(%190 : memref<!tpu.dma_semaphore, #tpu.memory_space<semaphore_mem>>) src(%186 : memref<128xf32, #tpu.memory_space<any>>) dst(%188 : memref<128xf32, #tpu.memory_space<vmem>>)
      %c32_i32_106 = arith.constant 32 : i32
      %191 = arith.addi %174, %c32_i32_106 : i32
      %c32_i32_107 = arith.constant 32 : i32
      %c0_i32_108 = arith.constant 0 : i32
      %192 = arith.cmpi eq, %c32_i32_107, %c0_i32_108 : i32
      %c1_i32_109 = arith.constant 1 : i32
      %193 = arith.select %192, %c1_i32_109, %c32_i32_107 : i32
      %194 = arith.remsi %191, %193 : i32
      %c0_i32_110 = arith.constant 0 : i32
      %195 = arith.cmpi ne, %194, %c0_i32_110 : i32
      %c0_i32_111 = arith.constant 0 : i32
      %196 = arith.cmpi slt, %194, %c0_i32_111 : i32
      %c0_i32_112 = arith.constant 0 : i32
      %197 = arith.cmpi slt, %193, %c0_i32_112 : i32
      %198 = arith.xori %196, %197 : i1
      %199 = arith.andi %198, %195 : i1
      %200 = arith.addi %194, %193 : i32
      %201 = arith.select %199, %200, %194 : i32
      %c0_i32_113 = arith.constant 0 : i32
      %202 = tpu.memref_slice %arg3[%39, %c0_i32_113] : memref<384x128xf32, #tpu.memory_space<any>> -> memref<1x128xf32, #tpu.memory_space<any>>
      %203 = tpu.memref_squeeze %202 : memref<1x128xf32, #tpu.memory_space<any>> -> memref<128xf32, #tpu.memory_space<any>>
      %c0_i32_114 = arith.constant 0 : i32
      %204 = tpu.memref_slice %arg6[%191, %c0_i32_114] : memref<128x128xf32, #tpu.memory_space<vmem>> -> memref<1x128xf32, #tpu.memory_space<vmem>>
      %205 = tpu.memref_squeeze %204 : memref<1x128xf32, #tpu.memory_space<vmem>> -> memref<128xf32, #tpu.memory_space<vmem>>
      %206 = tpu.memref_slice %arg7[%201] : memref<32x!tpu.dma_semaphore, #tpu.memory_space<semaphore_mem>> -> memref<1x!tpu.dma_semaphore, #tpu.memory_space<semaphore_mem>>
      %207 = tpu.memref_squeeze %206 : memref<1x!tpu.dma_semaphore, #tpu.memory_space<semaphore_mem>> -> memref<!tpu.dma_semaphore, #tpu.memory_space<semaphore_mem>>
      tpu.enqueue_dma source(%203 : memref<128xf32, #tpu.memory_space<any>>) target(%205 : memref<128xf32, #tpu.memory_space<vmem>>) target_semaphore(%207 : memref<!tpu.dma_semaphore, #tpu.memory_space<semaphore_mem>>)
      %c4_i32_115 = arith.constant 4 : i32
      %208 = arith.addi %7, %c4_i32_115 : i32
      %c32_i32_116 = arith.constant 32 : i32
      %c0_i32_117 = arith.constant 0 : i32
      %209 = arith.cmpi eq, %c32_i32_116, %c0_i32_117 : i32
      %c1_i32_118 = arith.constant 1 : i32
      %210 = arith.select %209, %c1_i32_118, %c32_i32_116 : i32
      %211 = arith.remsi %208, %210 : i32
      %c0_i32_119 = arith.constant 0 : i32
      %212 = arith.cmpi ne, %211, %c0_i32_119 : i32
      %c0_i32_120 = arith.constant 0 : i32
      %213 = arith.cmpi slt, %211, %c0_i32_120 : i32
      %c0_i32_121 = arith.constant 0 : i32
      %214 = arith.cmpi slt, %210, %c0_i32_121 : i32
      %215 = arith.xori %213, %214 : i1
      %216 = arith.andi %215, %212 : i1
      %217 = arith.addi %211, %210 : i32
      %218 = arith.select %216, %217, %211 : i32
      %c0_i32_122 = arith.constant 0 : i32
      %c0_i32_123 = arith.constant 0 : i32
      %c0_i32_124 = arith.constant 0 : i32
      %219 = tpu.memref_slice %arg3[%c0_i32_122, %c0_i32_124] : memref<384x128xf32, #tpu.memory_space<any>> -> memref<1x128xf32, #tpu.memory_space<any>>
      %220 = tpu.memref_squeeze %219 : memref<1x128xf32, #tpu.memory_space<any>> -> memref<128xf32, #tpu.memory_space<any>>
      %c0_i32_125 = arith.constant 0 : i32
      %221 = tpu.memref_slice %arg6[%c0_i32_123, %c0_i32_125] : memref<128x128xf32, #tpu.memory_space<vmem>> -> memref<1x128xf32, #tpu.memory_space<vmem>>
      %222 = tpu.memref_squeeze %221 : memref<1x128xf32, #tpu.memory_space<vmem>> -> memref<128xf32, #tpu.memory_space<vmem>>
      %223 = tpu.memref_slice %arg7[%218] : memref<32x!tpu.dma_semaphore, #tpu.memory_space<semaphore_mem>> -> memref<1x!tpu.dma_semaphore, #tpu.memory_space<semaphore_mem>>
      %224 = tpu.memref_squeeze %223 : memref<1x!tpu.dma_semaphore, #tpu.memory_space<semaphore_mem>> -> memref<!tpu.dma_semaphore, #tpu.memory_space<semaphore_mem>>
      tpu.wait_dma2 semaphore(%224 : memref<!tpu.dma_semaphore, #tpu.memory_space<semaphore_mem>>) src(%220 : memref<128xf32, #tpu.memory_space<any>>) dst(%222 : memref<128xf32, #tpu.memory_space<vmem>>)
      %c32_i32_126 = arith.constant 32 : i32
      %225 = arith.addi %208, %c32_i32_126 : i32
      %c32_i32_127 = arith.constant 32 : i32
      %c0_i32_128 = arith.constant 0 : i32
      %226 = arith.cmpi eq, %c32_i32_127, %c0_i32_128 : i32
      %c1_i32_129 = arith.constant 1 : i32
      %227 = arith.select %226, %c1_i32_129, %c32_i32_127 : i32
      %228 = arith.remsi %225, %227 : i32
      %c0_i32_130 = arith.constant 0 : i32
      %229 = arith.cmpi ne, %228, %c0_i32_130 : i32
      %c0_i32_131 = arith.constant 0 : i32
      %230 = arith.cmpi slt, %228, %c0_i32_131 : i32
      %c0_i32_132 = arith.constant 0 : i32
      %231 = arith.cmpi slt, %227, %c0_i32_132 : i32
      %232 = arith.xori %230, %231 : i1
      %233 = arith.andi %232, %229 : i1
      %234 = arith.addi %228, %227 : i32
      %235 = arith.select %233, %234, %228 : i32
      %c0_i32_133 = arith.constant 0 : i32
      %236 = tpu.memref_slice %arg3[%47, %c0_i32_133] : memref<384x128xf32, #tpu.memory_space<any>> -> memref<1x128xf32, #tpu.memory_space<any>>
      %237 = tpu.memref_squeeze %236 : memref<1x128xf32, #tpu.memory_space<any>> -> memref<128xf32, #tpu.memory_space<any>>
      %c0_i32_134 = arith.constant 0 : i32
      %238 = tpu.memref_slice %arg6[%225, %c0_i32_134] : memref<128x128xf32, #tpu.memory_space<vmem>> -> memref<1x128xf32, #tpu.memory_space<vmem>>
      %239 = tpu.memref_squeeze %238 : memref<1x128xf32, #tpu.memory_space<vmem>> -> memref<128xf32, #tpu.memory_space<vmem>>
      %240 = tpu.memref_slice %arg7[%235] : memref<32x!tpu.dma_semaphore, #tpu.memory_space<semaphore_mem>> -> memref<1x!tpu.dma_semaphore, #tpu.memory_space<semaphore_mem>>
      %241 = tpu.memref_squeeze %240 : memref<1x!tpu.dma_semaphore, #tpu.memory_space<semaphore_mem>> -> memref<!tpu.dma_semaphore, #tpu.memory_space<semaphore_mem>>
      tpu.enqueue_dma source(%237 : memref<128xf32, #tpu.memory_space<any>>) target(%239 : memref<128xf32, #tpu.memory_space<vmem>>) target_semaphore(%241 : memref<!tpu.dma_semaphore, #tpu.memory_space<semaphore_mem>>)
      %c5_i32_135 = arith.constant 5 : i32
      %242 = arith.addi %7, %c5_i32_135 : i32
      %c32_i32_136 = arith.constant 32 : i32
      %c0_i32_137 = arith.constant 0 : i32
      %243 = arith.cmpi eq, %c32_i32_136, %c0_i32_137 : i32
      %c1_i32_138 = arith.constant 1 : i32
      %244 = arith.select %243, %c1_i32_138, %c32_i32_136 : i32
      %245 = arith.remsi %242, %244 : i32
      %c0_i32_139 = arith.constant 0 : i32
      %246 = arith.cmpi ne, %245, %c0_i32_139 : i32
      %c0_i32_140 = arith.constant 0 : i32
      %247 = arith.cmpi slt, %245, %c0_i32_140 : i32
      %c0_i32_141 = arith.constant 0 : i32
      %248 = arith.cmpi slt, %244, %c0_i32_141 : i32
      %249 = arith.xori %247, %248 : i1
      %250 = arith.andi %249, %246 : i1
      %251 = arith.addi %245, %244 : i32
      %252 = arith.select %250, %251, %245 : i32
      %c0_i32_142 = arith.constant 0 : i32
      %c0_i32_143 = arith.constant 0 : i32
      %c0_i32_144 = arith.constant 0 : i32
      %253 = tpu.memref_slice %arg3[%c0_i32_142, %c0_i32_144] : memref<384x128xf32, #tpu.memory_space<any>> -> memref<1x128xf32, #tpu.memory_space<any>>
      %254 = tpu.memref_squeeze %253 : memref<1x128xf32, #tpu.memory_space<any>> -> memref<128xf32, #tpu.memory_space<any>>
      %c0_i32_145 = arith.constant 0 : i32
      %255 = tpu.memref_slice %arg6[%c0_i32_143, %c0_i32_145] : memref<128x128xf32, #tpu.memory_space<vmem>> -> memref<1x128xf32, #tpu.memory_space<vmem>>
      %256 = tpu.memref_squeeze %255 : memref<1x128xf32, #tpu.memory_space<vmem>> -> memref<128xf32, #tpu.memory_space<vmem>>
      %257 = tpu.memref_slice %arg7[%252] : memref<32x!tpu.dma_semaphore, #tpu.memory_space<semaphore_mem>> -> memref<1x!tpu.dma_semaphore, #tpu.memory_space<semaphore_mem>>
      %258 = tpu.memref_squeeze %257 : memref<1x!tpu.dma_semaphore, #tpu.memory_space<semaphore_mem>> -> memref<!tpu.dma_semaphore, #tpu.memory_space<semaphore_mem>>
      tpu.wait_dma2 semaphore(%258 : memref<!tpu.dma_semaphore, #tpu.memory_space<semaphore_mem>>) src(%254 : memref<128xf32, #tpu.memory_space<any>>) dst(%256 : memref<128xf32, #tpu.memory_space<vmem>>)
      %c32_i32_146 = arith.constant 32 : i32
      %259 = arith.addi %242, %c32_i32_146 : i32
      %c32_i32_147 = arith.constant 32 : i32
      %c0_i32_148 = arith.constant 0 : i32
      %260 = arith.cmpi eq, %c32_i32_147, %c0_i32_148 : i32
      %c1_i32_149 = arith.constant 1 : i32
      %261 = arith.select %260, %c1_i32_149, %c32_i32_147 : i32
      %262 = arith.remsi %259, %261 : i32
      %c0_i32_150 = arith.constant 0 : i32
      %263 = arith.cmpi ne, %262, %c0_i32_150 : i32
      %c0_i32_151 = arith.constant 0 : i32
      %264 = arith.cmpi slt, %262, %c0_i32_151 : i32
      %c0_i32_152 = arith.constant 0 : i32
      %265 = arith.cmpi slt, %261, %c0_i32_152 : i32
      %266 = arith.xori %264, %265 : i1
      %267 = arith.andi %266, %263 : i1
      %268 = arith.addi %262, %261 : i32
      %269 = arith.select %267, %268, %262 : i32
      %c0_i32_153 = arith.constant 0 : i32
      %270 = tpu.memref_slice %arg3[%55, %c0_i32_153] : memref<384x128xf32, #tpu.memory_space<any>> -> memref<1x128xf32, #tpu.memory_space<any>>
      %271 = tpu.memref_squeeze %270 : memref<1x128xf32, #tpu.memory_space<any>> -> memref<128xf32, #tpu.memory_space<any>>
      %c0_i32_154 = arith.constant 0 : i32
      %272 = tpu.memref_slice %arg6[%259, %c0_i32_154] : memref<128x128xf32, #tpu.memory_space<vmem>> -> memref<1x128xf32, #tpu.memory_space<vmem>>
      %273 = tpu.memref_squeeze %272 : memref<1x128xf32, #tpu.memory_space<vmem>> -> memref<128xf32, #tpu.memory_space<vmem>>
      %274 = tpu.memref_slice %arg7[%269] : memref<32x!tpu.dma_semaphore, #tpu.memory_space<semaphore_mem>> -> memref<1x!tpu.dma_semaphore, #tpu.memory_space<semaphore_mem>>
      %275 = tpu.memref_squeeze %274 : memref<1x!tpu.dma_semaphore, #tpu.memory_space<semaphore_mem>> -> memref<!tpu.dma_semaphore, #tpu.memory_space<semaphore_mem>>
      tpu.enqueue_dma source(%271 : memref<128xf32, #tpu.memory_space<any>>) target(%273 : memref<128xf32, #tpu.memory_space<vmem>>) target_semaphore(%275 : memref<!tpu.dma_semaphore, #tpu.memory_space<semaphore_mem>>)
      %c6_i32_155 = arith.constant 6 : i32
      %276 = arith.addi %7, %c6_i32_155 : i32
      %c32_i32_156 = arith.constant 32 : i32
      %c0_i32_157 = arith.constant 0 : i32
      %277 = arith.cmpi eq, %c32_i32_156, %c0_i32_157 : i32
      %c1_i32_158 = arith.constant 1 : i32
      %278 = arith.select %277, %c1_i32_158, %c32_i32_156 : i32
      %279 = arith.remsi %276, %278 : i32
      %c0_i32_159 = arith.constant 0 : i32
      %280 = arith.cmpi ne, %279, %c0_i32_159 : i32
      %c0_i32_160 = arith.constant 0 : i32
      %281 = arith.cmpi slt, %279, %c0_i32_160 : i32
      %c0_i32_161 = arith.constant 0 : i32
      %282 = arith.cmpi slt, %278, %c0_i32_161 : i32
      %283 = arith.xori %281, %282 : i1
      %284 = arith.andi %283, %280 : i1
      %285 = arith.addi %279, %278 : i32
      %286 = arith.select %284, %285, %279 : i32
      %c0_i32_162 = arith.constant 0 : i32
      %c0_i32_163 = arith.constant 0 : i32
      %c0_i32_164 = arith.constant 0 : i32
      %287 = tpu.memref_slice %arg3[%c0_i32_162, %c0_i32_164] : memref<384x128xf32, #tpu.memory_space<any>> -> memref<1x128xf32, #tpu.memory_space<any>>
      %288 = tpu.memref_squeeze %287 : memref<1x128xf32, #tpu.memory_space<any>> -> memref<128xf32, #tpu.memory_space<any>>
      %c0_i32_165 = arith.constant 0 : i32
      %289 = tpu.memref_slice %arg6[%c0_i32_163, %c0_i32_165] : memref<128x128xf32, #tpu.memory_space<vmem>> -> memref<1x128xf32, #tpu.memory_space<vmem>>
      %290 = tpu.memref_squeeze %289 : memref<1x128xf32, #tpu.memory_space<vmem>> -> memref<128xf32, #tpu.memory_space<vmem>>
      %291 = tpu.memref_slice %arg7[%286] : memref<32x!tpu.dma_semaphore, #tpu.memory_space<semaphore_mem>> -> memref<1x!tpu.dma_semaphore, #tpu.memory_space<semaphore_mem>>
      %292 = tpu.memref_squeeze %291 : memref<1x!tpu.dma_semaphore, #tpu.memory_space<semaphore_mem>> -> memref<!tpu.dma_semaphore, #tpu.memory_space<semaphore_mem>>
      tpu.wait_dma2 semaphore(%292 : memref<!tpu.dma_semaphore, #tpu.memory_space<semaphore_mem>>) src(%288 : memref<128xf32, #tpu.memory_space<any>>) dst(%290 : memref<128xf32, #tpu.memory_space<vmem>>)
      %c32_i32_166 = arith.constant 32 : i32
      %293 = arith.addi %276, %c32_i32_166 : i32
      %c32_i32_167 = arith.constant 32 : i32
      %c0_i32_168 = arith.constant 0 : i32
      %294 = arith.cmpi eq, %c32_i32_167, %c0_i32_168 : i32
      %c1_i32_169 = arith.constant 1 : i32
      %295 = arith.select %294, %c1_i32_169, %c32_i32_167 : i32
      %296 = arith.remsi %293, %295 : i32
      %c0_i32_170 = arith.constant 0 : i32
      %297 = arith.cmpi ne, %296, %c0_i32_170 : i32
      %c0_i32_171 = arith.constant 0 : i32
      %298 = arith.cmpi slt, %296, %c0_i32_171 : i32
      %c0_i32_172 = arith.constant 0 : i32
      %299 = arith.cmpi slt, %295, %c0_i32_172 : i32
      %300 = arith.xori %298, %299 : i1
      %301 = arith.andi %300, %297 : i1
      %302 = arith.addi %296, %295 : i32
      %303 = arith.select %301, %302, %296 : i32
      %c0_i32_173 = arith.constant 0 : i32
      %304 = tpu.memref_slice %arg3[%63, %c0_i32_173] : memref<384x128xf32, #tpu.memory_space<any>> -> memref<1x128xf32, #tpu.memory_space<any>>
      %305 = tpu.memref_squeeze %304 : memref<1x128xf32, #tpu.memory_space<any>> -> memref<128xf32, #tpu.memory_space<any>>
      %c0_i32_174 = arith.constant 0 : i32
      %306 = tpu.memref_slice %arg6[%293, %c0_i32_174] : memref<128x128xf32, #tpu.memory_space<vmem>> -> memref<1x128xf32, #tpu.memory_space<vmem>>
      %307 = tpu.memref_squeeze %306 : memref<1x128xf32, #tpu.memory_space<vmem>> -> memref<128xf32, #tpu.memory_space<vmem>>
      %308 = tpu.memref_slice %arg7[%303] : memref<32x!tpu.dma_semaphore, #tpu.memory_space<semaphore_mem>> -> memref<1x!tpu.dma_semaphore, #tpu.memory_space<semaphore_mem>>
      %309 = tpu.memref_squeeze %308 : memref<1x!tpu.dma_semaphore, #tpu.memory_space<semaphore_mem>> -> memref<!tpu.dma_semaphore, #tpu.memory_space<semaphore_mem>>
      tpu.enqueue_dma source(%305 : memref<128xf32, #tpu.memory_space<any>>) target(%307 : memref<128xf32, #tpu.memory_space<vmem>>) target_semaphore(%309 : memref<!tpu.dma_semaphore, #tpu.memory_space<semaphore_mem>>)
      %c7_i32_175 = arith.constant 7 : i32
      %310 = arith.addi %7, %c7_i32_175 : i32
      %c32_i32_176 = arith.constant 32 : i32
      %c0_i32_177 = arith.constant 0 : i32
      %311 = arith.cmpi eq, %c32_i32_176, %c0_i32_177 : i32
      %c1_i32_178 = arith.constant 1 : i32
      %312 = arith.select %311, %c1_i32_178, %c32_i32_176 : i32
      %313 = arith.remsi %310, %312 : i32
      %c0_i32_179 = arith.constant 0 : i32
      %314 = arith.cmpi ne, %313, %c0_i32_179 : i32
      %c0_i32_180 = arith.constant 0 : i32
      %315 = arith.cmpi slt, %313, %c0_i32_180 : i32
      %c0_i32_181 = arith.constant 0 : i32
      %316 = arith.cmpi slt, %312, %c0_i32_181 : i32
      %317 = arith.xori %315, %316 : i1
      %318 = arith.andi %317, %314 : i1
      %319 = arith.addi %313, %312 : i32
      %320 = arith.select %318, %319, %313 : i32
      %c0_i32_182 = arith.constant 0 : i32
      %c0_i32_183 = arith.constant 0 : i32
      %c0_i32_184 = arith.constant 0 : i32
      %321 = tpu.memref_slice %arg3[%c0_i32_182, %c0_i32_184] : memref<384x128xf32, #tpu.memory_space<any>> -> memref<1x128xf32, #tpu.memory_space<any>>
      %322 = tpu.memref_squeeze %321 : memref<1x128xf32, #tpu.memory_space<any>> -> memref<128xf32, #tpu.memory_space<any>>
      %c0_i32_185 = arith.constant 0 : i32
      %323 = tpu.memref_slice %arg6[%c0_i32_183, %c0_i32_185] : memref<128x128xf32, #tpu.memory_space<vmem>> -> memref<1x128xf32, #tpu.memory_space<vmem>>
      %324 = tpu.memref_squeeze %323 : memref<1x128xf32, #tpu.memory_space<vmem>> -> memref<128xf32, #tpu.memory_space<vmem>>
      %325 = tpu.memref_slice %arg7[%320] : memref<32x!tpu.dma_semaphore, #tpu.memory_space<semaphore_mem>> -> memref<1x!tpu.dma_semaphore, #tpu.memory_space<semaphore_mem>>
      %326 = tpu.memref_squeeze %325 : memref<1x!tpu.dma_semaphore, #tpu.memory_space<semaphore_mem>> -> memref<!tpu.dma_semaphore, #tpu.memory_space<semaphore_mem>>
      tpu.wait_dma2 semaphore(%326 : memref<!tpu.dma_semaphore, #tpu.memory_space<semaphore_mem>>) src(%322 : memref<128xf32, #tpu.memory_space<any>>) dst(%324 : memref<128xf32, #tpu.memory_space<vmem>>)
      %c32_i32_186 = arith.constant 32 : i32
      %327 = arith.addi %310, %c32_i32_186 : i32
      %c32_i32_187 = arith.constant 32 : i32
      %c0_i32_188 = arith.constant 0 : i32
      %328 = arith.cmpi eq, %c32_i32_187, %c0_i32_188 : i32
      %c1_i32_189 = arith.constant 1 : i32
      %329 = arith.select %328, %c1_i32_189, %c32_i32_187 : i32
      %330 = arith.remsi %327, %329 : i32
      %c0_i32_190 = arith.constant 0 : i32
      %331 = arith.cmpi ne, %330, %c0_i32_190 : i32
      %c0_i32_191 = arith.constant 0 : i32
      %332 = arith.cmpi slt, %330, %c0_i32_191 : i32
      %c0_i32_192 = arith.constant 0 : i32
      %333 = arith.cmpi slt, %329, %c0_i32_192 : i32
      %334 = arith.xori %332, %333 : i1
      %335 = arith.andi %334, %331 : i1
      %336 = arith.addi %330, %329 : i32
      %337 = arith.select %335, %336, %330 : i32
      %c0_i32_193 = arith.constant 0 : i32
      %338 = tpu.memref_slice %arg3[%71, %c0_i32_193] : memref<384x128xf32, #tpu.memory_space<any>> -> memref<1x128xf32, #tpu.memory_space<any>>
      %339 = tpu.memref_squeeze %338 : memref<1x128xf32, #tpu.memory_space<any>> -> memref<128xf32, #tpu.memory_space<any>>
      %c0_i32_194 = arith.constant 0 : i32
      %340 = tpu.memref_slice %arg6[%327, %c0_i32_194] : memref<128x128xf32, #tpu.memory_space<vmem>> -> memref<1x128xf32, #tpu.memory_space<vmem>>
      %341 = tpu.memref_squeeze %340 : memref<1x128xf32, #tpu.memory_space<vmem>> -> memref<128xf32, #tpu.memory_space<vmem>>
      %342 = tpu.memref_slice %arg7[%337] : memref<32x!tpu.dma_semaphore, #tpu.memory_space<semaphore_mem>> -> memref<1x!tpu.dma_semaphore, #tpu.memory_space<semaphore_mem>>
      %343 = tpu.memref_squeeze %342 : memref<1x!tpu.dma_semaphore, #tpu.memory_space<semaphore_mem>> -> memref<!tpu.dma_semaphore, #tpu.memory_space<semaphore_mem>>
      tpu.enqueue_dma source(%339 : memref<128xf32, #tpu.memory_space<any>>) target(%341 : memref<128xf32, #tpu.memory_space<vmem>>) target_semaphore(%343 : memref<!tpu.dma_semaphore, #tpu.memory_space<semaphore_mem>>)
      %344 = tpu.assume_multiple %7, 8 : i32
      %345 = arith.index_cast %344 : i32 to index
      %c0 = arith.constant 0 : index
      %346 = vector.load %arg6[%345, %c0] : memref<128x128xf32, #tpu.memory_space<vmem>>, vector<8x128xf32>
      %347 = arith.index_cast %344 : i32 to index
      %c0_195 = arith.constant 0 : index
      %348 = vector.load %arg4[%347, %c0_195] : memref<128x128xf32, #tpu.memory_space<vmem>>, vector<8x128xf32>
      %349 = arith.addf %346, %348 : vector<8x128xf32>
      %c0_196 = arith.constant 0 : index
      %350 = arith.index_cast %344 : i32 to index
      %c0_197 = arith.constant 0 : index
      %351 = vector.load %arg5[%c0_196, %350, %c0_197] : memref<1x128x128xf32, #tpu.memory_space<vmem>>, vector<1x8x128xf32>
      %352 = vector.shape_cast %351 : vector<1x8x128xf32> to vector<8x128xf32>
      %353 = vector.shape_cast %349 : vector<8x128xf32> to vector<1x8x128xf32>
      tpu.vector_store %arg5[%c0_196, %350, %c0_197], %353 {strides = array<i32>} : memref<1x128x128xf32, #tpu.memory_space<vmem>>, vector<1x8x128xf32>,
    }
    %c12_i32_3 = arith.constant 12 : i32
    %c0_i32_4 = arith.constant 0 : i32
    %c4_i32 = arith.constant 4 : i32
    %3 = arith.addi %c0_i32_4, %c4_i32 : i32
    %c1_i32_5 = arith.constant 1 : i32
    scf.for %arg8 = %c0_i32_4 to %3 step %c1_i32_5  : i32 {
      %c1_i32_7 = arith.constant 1 : i32
      %4 = arith.muli %arg8, %c1_i32_7 : i32
      %c12_i32_8 = arith.constant 12 : i32
      %5 = arith.addi %c12_i32_8, %4 : i32
      %c8_i32 = arith.constant 8 : i32
      %6 = arith.muli %5, %c8_i32 : i32
      %7 = tpu.assume_multiple %6, 8 : i32
      %c0_i32_9 = arith.constant 0 : i32
      %8 = arith.addi %7, %c0_i32_9 : i32
      %c32_i32_10 = arith.constant 32 : i32
      %c0_i32_11 = arith.constant 0 : i32
      %9 = arith.cmpi eq, %c32_i32_10, %c0_i32_11 : i32
      %c1_i32_12 = arith.constant 1 : i32
      %10 = arith.select %9, %c1_i32_12, %c32_i32_10 : i32
      %11 = arith.remsi %8, %10 : i32
      %c0_i32_13 = arith.constant 0 : i32
      %12 = arith.cmpi ne, %11, %c0_i32_13 : i32
      %c0_i32_14 = arith.constant 0 : i32
      %13 = arith.cmpi slt, %11, %c0_i32_14 : i32
      %c0_i32_15 = arith.constant 0 : i32
      %14 = arith.cmpi slt, %10, %c0_i32_15 : i32
      %15 = arith.xori %13, %14 : i1
      %16 = arith.andi %15, %12 : i1
      %17 = arith.addi %11, %10 : i32
      %18 = arith.select %16, %17, %11 : i32
      %c0_i32_16 = arith.constant 0 : i32
      %c0_i32_17 = arith.constant 0 : i32
      %c0_i32_18 = arith.constant 0 : i32
      %19 = tpu.memref_slice %arg3[%c0_i32_16, %c0_i32_18] : memref<384x128xf32, #tpu.memory_space<any>> -> memref<1x128xf32, #tpu.memory_space<any>>
      %20 = tpu.memref_squeeze %19 : memref<1x128xf32, #tpu.memory_space<any>> -> memref<128xf32, #tpu.memory_space<any>>
      %c0_i32_19 = arith.constant 0 : i32
      %21 = tpu.memref_slice %arg6[%c0_i32_17, %c0_i32_19] : memref<128x128xf32, #tpu.memory_space<vmem>> -> memref<1x128xf32, #tpu.memory_space<vmem>>
      %22 = tpu.memref_squeeze %21 : memref<1x128xf32, #tpu.memory_space<vmem>> -> memref<128xf32, #tpu.memory_space<vmem>>
      %23 = tpu.memref_slice %arg7[%18] : memref<32x!tpu.dma_semaphore, #tpu.memory_space<semaphore_mem>> -> memref<1x!tpu.dma_semaphore, #tpu.memory_space<semaphore_mem>>
      %24 = tpu.memref_squeeze %23 : memref<1x!tpu.dma_semaphore, #tpu.memory_space<semaphore_mem>> -> memref<!tpu.dma_semaphore, #tpu.memory_space<semaphore_mem>>
      tpu.wait_dma2 semaphore(%24 : memref<!tpu.dma_semaphore, #tpu.memory_space<semaphore_mem>>) src(%20 : memref<128xf32, #tpu.memory_space<any>>) dst(%22 : memref<128xf32, #tpu.memory_space<vmem>>)
      %c1_i32_20 = arith.constant 1 : i32
      %25 = arith.addi %7, %c1_i32_20 : i32
      %c32_i32_21 = arith.constant 32 : i32
      %c0_i32_22 = arith.constant 0 : i32
      %26 = arith.cmpi eq, %c32_i32_21, %c0_i32_22 : i32
      %c1_i32_23 = arith.constant 1 : i32
      %27 = arith.select %26, %c1_i32_23, %c32_i32_21 : i32
      %28 = arith.remsi %25, %27 : i32
      %c0_i32_24 = arith.constant 0 : i32
      %29 = arith.cmpi ne, %28, %c0_i32_24 : i32
      %c0_i32_25 = arith.constant 0 : i32
      %30 = arith.cmpi slt, %28, %c0_i32_25 : i32
      %c0_i32_26 = arith.constant 0 : i32
      %31 = arith.cmpi slt, %27, %c0_i32_26 : i32
      %32 = arith.xori %30, %31 : i1
      %33 = arith.andi %32, %29 : i1
      %34 = arith.addi %28, %27 : i32
      %35 = arith.select %33, %34, %28 : i32
      %c0_i32_27 = arith.constant 0 : i32
      %c0_i32_28 = arith.constant 0 : i32
      %c0_i32_29 = arith.constant 0 : i32
      %36 = tpu.memref_slice %arg3[%c0_i32_27, %c0_i32_29] : memref<384x128xf32, #tpu.memory_space<any>> -> memref<1x128xf32, #tpu.memory_space<any>>
      %37 = tpu.memref_squeeze %36 : memref<1x128xf32, #tpu.memory_space<any>> -> memref<128xf32, #tpu.memory_space<any>>
      %c0_i32_30 = arith.constant 0 : i32
      %38 = tpu.memref_slice %arg6[%c0_i32_28, %c0_i32_30] : memref<128x128xf32, #tpu.memory_space<vmem>> -> memref<1x128xf32, #tpu.memory_space<vmem>>
      %39 = tpu.memref_squeeze %38 : memref<1x128xf32, #tpu.memory_space<vmem>> -> memref<128xf32, #tpu.memory_space<vmem>>
      %40 = tpu.memref_slice %arg7[%35] : memref<32x!tpu.dma_semaphore, #tpu.memory_space<semaphore_mem>> -> memref<1x!tpu.dma_semaphore, #tpu.memory_space<semaphore_mem>>
      %41 = tpu.memref_squeeze %40 : memref<1x!tpu.dma_semaphore, #tpu.memory_space<semaphore_mem>> -> memref<!tpu.dma_semaphore, #tpu.memory_space<semaphore_mem>>
      tpu.wait_dma2 semaphore(%41 : memref<!tpu.dma_semaphore, #tpu.memory_space<semaphore_mem>>) src(%37 : memref<128xf32, #tpu.memory_space<any>>) dst(%39 : memref<128xf32, #tpu.memory_space<vmem>>)
      %c2_i32 = arith.constant 2 : i32
      %42 = arith.addi %7, %c2_i32 : i32
      %c32_i32_31 = arith.constant 32 : i32
      %c0_i32_32 = arith.constant 0 : i32
      %43 = arith.cmpi eq, %c32_i32_31, %c0_i32_32 : i32
      %c1_i32_33 = arith.constant 1 : i32
      %44 = arith.select %43, %c1_i32_33, %c32_i32_31 : i32
      %45 = arith.remsi %42, %44 : i32
      %c0_i32_34 = arith.constant 0 : i32
      %46 = arith.cmpi ne, %45, %c0_i32_34 : i32
      %c0_i32_35 = arith.constant 0 : i32
      %47 = arith.cmpi slt, %45, %c0_i32_35 : i32
      %c0_i32_36 = arith.constant 0 : i32
      %48 = arith.cmpi slt, %44, %c0_i32_36 : i32
      %49 = arith.xori %47, %48 : i1
      %50 = arith.andi %49, %46 : i1
      %51 = arith.addi %45, %44 : i32
      %52 = arith.select %50, %51, %45 : i32
      %c0_i32_37 = arith.constant 0 : i32
      %c0_i32_38 = arith.constant 0 : i32
      %c0_i32_39 = arith.constant 0 : i32
      %53 = tpu.memref_slice %arg3[%c0_i32_37, %c0_i32_39] : memref<384x128xf32, #tpu.memory_space<any>> -> memref<1x128xf32, #tpu.memory_space<any>>
      %54 = tpu.memref_squeeze %53 : memref<1x128xf32, #tpu.memory_space<any>> -> memref<128xf32, #tpu.memory_space<any>>
      %c0_i32_40 = arith.constant 0 : i32
      %55 = tpu.memref_slice %arg6[%c0_i32_38, %c0_i32_40] : memref<128x128xf32, #tpu.memory_space<vmem>> -> memref<1x128xf32, #tpu.memory_space<vmem>>
      %56 = tpu.memref_squeeze %55 : memref<1x128xf32, #tpu.memory_space<vmem>> -> memref<128xf32, #tpu.memory_space<vmem>>
      %57 = tpu.memref_slice %arg7[%52] : memref<32x!tpu.dma_semaphore, #tpu.memory_space<semaphore_mem>> -> memref<1x!tpu.dma_semaphore, #tpu.memory_space<semaphore_mem>>
      %58 = tpu.memref_squeeze %57 : memref<1x!tpu.dma_semaphore, #tpu.memory_space<semaphore_mem>> -> memref<!tpu.dma_semaphore, #tpu.memory_space<semaphore_mem>>
      tpu.wait_dma2 semaphore(%58 : memref<!tpu.dma_semaphore, #tpu.memory_space<semaphore_mem>>) src(%54 : memref<128xf32, #tpu.memory_space<any>>) dst(%56 : memref<128xf32, #tpu.memory_space<vmem>>)
      %c3_i32 = arith.constant 3 : i32
      %59 = arith.addi %7, %c3_i32 : i32
      %c32_i32_41 = arith.constant 32 : i32
      %c0_i32_42 = arith.constant 0 : i32
      %60 = arith.cmpi eq, %c32_i32_41, %c0_i32_42 : i32
      %c1_i32_43 = arith.constant 1 : i32
      %61 = arith.select %60, %c1_i32_43, %c32_i32_41 : i32
      %62 = arith.remsi %59, %61 : i32
      %c0_i32_44 = arith.constant 0 : i32
      %63 = arith.cmpi ne, %62, %c0_i32_44 : i32
      %c0_i32_45 = arith.constant 0 : i32
      %64 = arith.cmpi slt, %62, %c0_i32_45 : i32
      %c0_i32_46 = arith.constant 0 : i32
      %65 = arith.cmpi slt, %61, %c0_i32_46 : i32
      %66 = arith.xori %64, %65 : i1
      %67 = arith.andi %66, %63 : i1
      %68 = arith.addi %62, %61 : i32
      %69 = arith.select %67, %68, %62 : i32
      %c0_i32_47 = arith.constant 0 : i32
      %c0_i32_48 = arith.constant 0 : i32
      %c0_i32_49 = arith.constant 0 : i32
      %70 = tpu.memref_slice %arg3[%c0_i32_47, %c0_i32_49] : memref<384x128xf32, #tpu.memory_space<any>> -> memref<1x128xf32, #tpu.memory_space<any>>
      %71 = tpu.memref_squeeze %70 : memref<1x128xf32, #tpu.memory_space<any>> -> memref<128xf32, #tpu.memory_space<any>>
      %c0_i32_50 = arith.constant 0 : i32
      %72 = tpu.memref_slice %arg6[%c0_i32_48, %c0_i32_50] : memref<128x128xf32, #tpu.memory_space<vmem>> -> memref<1x128xf32, #tpu.memory_space<vmem>>
      %73 = tpu.memref_squeeze %72 : memref<1x128xf32, #tpu.memory_space<vmem>> -> memref<128xf32, #tpu.memory_space<vmem>>
      %74 = tpu.memref_slice %arg7[%69] : memref<32x!tpu.dma_semaphore, #tpu.memory_space<semaphore_mem>> -> memref<1x!tpu.dma_semaphore, #tpu.memory_space<semaphore_mem>>
      %75 = tpu.memref_squeeze %74 : memref<1x!tpu.dma_semaphore, #tpu.memory_space<semaphore_mem>> -> memref<!tpu.dma_semaphore, #tpu.memory_space<semaphore_mem>>
      tpu.wait_dma2 semaphore(%75 : memref<!tpu.dma_semaphore, #tpu.memory_space<semaphore_mem>>) src(%71 : memref<128xf32, #tpu.memory_space<any>>) dst(%73 : memref<128xf32, #tpu.memory_space<vmem>>)
      %c4_i32_51 = arith.constant 4 : i32
      %76 = arith.addi %7, %c4_i32_51 : i32
      %c32_i32_52 = arith.constant 32 : i32
      %c0_i32_53 = arith.constant 0 : i32
      %77 = arith.cmpi eq, %c32_i32_52, %c0_i32_53 : i32
      %c1_i32_54 = arith.constant 1 : i32
      %78 = arith.select %77, %c1_i32_54, %c32_i32_52 : i32
      %79 = arith.remsi %76, %78 : i32
      %c0_i32_55 = arith.constant 0 : i32
      %80 = arith.cmpi ne, %79, %c0_i32_55 : i32
      %c0_i32_56 = arith.constant 0 : i32
      %81 = arith.cmpi slt, %79, %c0_i32_56 : i32
      %c0_i32_57 = arith.constant 0 : i32
      %82 = arith.cmpi slt, %78, %c0_i32_57 : i32
      %83 = arith.xori %81, %82 : i1
      %84 = arith.andi %83, %80 : i1
      %85 = arith.addi %79, %78 : i32
      %86 = arith.select %84, %85, %79 : i32
      %c0_i32_58 = arith.constant 0 : i32
      %c0_i32_59 = arith.constant 0 : i32
      %c0_i32_60 = arith.constant 0 : i32
      %87 = tpu.memref_slice %arg3[%c0_i32_58, %c0_i32_60] : memref<384x128xf32, #tpu.memory_space<any>> -> memref<1x128xf32, #tpu.memory_space<any>>
      %88 = tpu.memref_squeeze %87 : memref<1x128xf32, #tpu.memory_space<any>> -> memref<128xf32, #tpu.memory_space<any>>
      %c0_i32_61 = arith.constant 0 : i32
      %89 = tpu.memref_slice %arg6[%c0_i32_59, %c0_i32_61] : memref<128x128xf32, #tpu.memory_space<vmem>> -> memref<1x128xf32, #tpu.memory_space<vmem>>
      %90 = tpu.memref_squeeze %89 : memref<1x128xf32, #tpu.memory_space<vmem>> -> memref<128xf32, #tpu.memory_space<vmem>>
      %91 = tpu.memref_slice %arg7[%86] : memref<32x!tpu.dma_semaphore, #tpu.memory_space<semaphore_mem>> -> memref<1x!tpu.dma_semaphore, #tpu.memory_space<semaphore_mem>>
      %92 = tpu.memref_squeeze %91 : memref<1x!tpu.dma_semaphore, #tpu.memory_space<semaphore_mem>> -> memref<!tpu.dma_semaphore, #tpu.memory_space<semaphore_mem>>
      tpu.wait_dma2 semaphore(%92 : memref<!tpu.dma_semaphore, #tpu.memory_space<semaphore_mem>>) src(%88 : memref<128xf32, #tpu.memory_space<any>>) dst(%90 : memref<128xf32, #tpu.memory_space<vmem>>)
      %c5_i32 = arith.constant 5 : i32
      %93 = arith.addi %7, %c5_i32 : i32
      %c32_i32_62 = arith.constant 32 : i32
      %c0_i32_63 = arith.constant 0 : i32
      %94 = arith.cmpi eq, %c32_i32_62, %c0_i32_63 : i32
      %c1_i32_64 = arith.constant 1 : i32
      %95 = arith.select %94, %c1_i32_64, %c32_i32_62 : i32
      %96 = arith.remsi %93, %95 : i32
      %c0_i32_65 = arith.constant 0 : i32
      %97 = arith.cmpi ne, %96, %c0_i32_65 : i32
      %c0_i32_66 = arith.constant 0 : i32
      %98 = arith.cmpi slt, %96, %c0_i32_66 : i32
      %c0_i32_67 = arith.constant 0 : i32
      %99 = arith.cmpi slt, %95, %c0_i32_67 : i32
      %100 = arith.xori %98, %99 : i1
      %101 = arith.andi %100, %97 : i1
      %102 = arith.addi %96, %95 : i32
      %103 = arith.select %101, %102, %96 : i32
      %c0_i32_68 = arith.constant 0 : i32
      %c0_i32_69 = arith.constant 0 : i32
      %c0_i32_70 = arith.constant 0 : i32
      %104 = tpu.memref_slice %arg3[%c0_i32_68, %c0_i32_70] : memref<384x128xf32, #tpu.memory_space<any>> -> memref<1x128xf32, #tpu.memory_space<any>>
      %105 = tpu.memref_squeeze %104 : memref<1x128xf32, #tpu.memory_space<any>> -> memref<128xf32, #tpu.memory_space<any>>
      %c0_i32_71 = arith.constant 0 : i32
      %106 = tpu.memref_slice %arg6[%c0_i32_69, %c0_i32_71] : memref<128x128xf32, #tpu.memory_space<vmem>> -> memref<1x128xf32, #tpu.memory_space<vmem>>
      %107 = tpu.memref_squeeze %106 : memref<1x128xf32, #tpu.memory_space<vmem>> -> memref<128xf32, #tpu.memory_space<vmem>>
      %108 = tpu.memref_slice %arg7[%103] : memref<32x!tpu.dma_semaphore, #tpu.memory_space<semaphore_mem>> -> memref<1x!tpu.dma_semaphore, #tpu.memory_space<semaphore_mem>>
      %109 = tpu.memref_squeeze %108 : memref<1x!tpu.dma_semaphore, #tpu.memory_space<semaphore_mem>> -> memref<!tpu.dma_semaphore, #tpu.memory_space<semaphore_mem>>
      tpu.wait_dma2 semaphore(%109 : memref<!tpu.dma_semaphore, #tpu.memory_space<semaphore_mem>>) src(%105 : memref<128xf32, #tpu.memory_space<any>>) dst(%107 : memref<128xf32, #tpu.memory_space<vmem>>)
      %c6_i32 = arith.constant 6 : i32
      %110 = arith.addi %7, %c6_i32 : i32
      %c32_i32_72 = arith.constant 32 : i32
      %c0_i32_73 = arith.constant 0 : i32
      %111 = arith.cmpi eq, %c32_i32_72, %c0_i32_73 : i32
      %c1_i32_74 = arith.constant 1 : i32
      %112 = arith.select %111, %c1_i32_74, %c32_i32_72 : i32
      %113 = arith.remsi %110, %112 : i32
      %c0_i32_75 = arith.constant 0 : i32
      %114 = arith.cmpi ne, %113, %c0_i32_75 : i32
      %c0_i32_76 = arith.constant 0 : i32
      %115 = arith.cmpi slt, %113, %c0_i32_76 : i32
      %c0_i32_77 = arith.constant 0 : i32
      %116 = arith.cmpi slt, %112, %c0_i32_77 : i32
      %117 = arith.xori %115, %116 : i1
      %118 = arith.andi %117, %114 : i1
      %119 = arith.addi %113, %112 : i32
      %120 = arith.select %118, %119, %113 : i32
      %c0_i32_78 = arith.constant 0 : i32
      %c0_i32_79 = arith.constant 0 : i32
      %c0_i32_80 = arith.constant 0 : i32
      %121 = tpu.memref_slice %arg3[%c0_i32_78, %c0_i32_80] : memref<384x128xf32, #tpu.memory_space<any>> -> memref<1x128xf32, #tpu.memory_space<any>>
      %122 = tpu.memref_squeeze %121 : memref<1x128xf32, #tpu.memory_space<any>> -> memref<128xf32, #tpu.memory_space<any>>
      %c0_i32_81 = arith.constant 0 : i32
      %123 = tpu.memref_slice %arg6[%c0_i32_79, %c0_i32_81] : memref<128x128xf32, #tpu.memory_space<vmem>> -> memref<1x128xf32, #tpu.memory_space<vmem>>
      %124 = tpu.memref_squeeze %123 : memref<1x128xf32, #tpu.memory_space<vmem>> -> memref<128xf32, #tpu.memory_space<vmem>>
      %125 = tpu.memref_slice %arg7[%120] : memref<32x!tpu.dma_semaphore, #tpu.memory_space<semaphore_mem>> -> memref<1x!tpu.dma_semaphore, #tpu.memory_space<semaphore_mem>>
      %126 = tpu.memref_squeeze %125 : memref<1x!tpu.dma_semaphore, #tpu.memory_space<semaphore_mem>> -> memref<!tpu.dma_semaphore, #tpu.memory_space<semaphore_mem>>
      tpu.wait_dma2 semaphore(%126 : memref<!tpu.dma_semaphore, #tpu.memory_space<semaphore_mem>>) src(%122 : memref<128xf32, #tpu.memory_space<any>>) dst(%124 : memref<128xf32, #tpu.memory_space<vmem>>)
      %c7_i32 = arith.constant 7 : i32
      %127 = arith.addi %7, %c7_i32 : i32
      %c32_i32_82 = arith.constant 32 : i32
      %c0_i32_83 = arith.constant 0 : i32
      %128 = arith.cmpi eq, %c32_i32_82, %c0_i32_83 : i32
      %c1_i32_84 = arith.constant 1 : i32
      %129 = arith.select %128, %c1_i32_84, %c32_i32_82 : i32
      %130 = arith.remsi %127, %129 : i32
      %c0_i32_85 = arith.constant 0 : i32
      %131 = arith.cmpi ne, %130, %c0_i32_85 : i32
      %c0_i32_86 = arith.constant 0 : i32
      %132 = arith.cmpi slt, %130, %c0_i32_86 : i32
      %c0_i32_87 = arith.constant 0 : i32
      %133 = arith.cmpi slt, %129, %c0_i32_87 : i32
      %134 = arith.xori %132, %133 : i1
      %135 = arith.andi %134, %131 : i1
      %136 = arith.addi %130, %129 : i32
      %137 = arith.select %135, %136, %130 : i32
      %c0_i32_88 = arith.constant 0 : i32
      %c0_i32_89 = arith.constant 0 : i32
      %c0_i32_90 = arith.constant 0 : i32
      %138 = tpu.memref_slice %arg3[%c0_i32_88, %c0_i32_90] : memref<384x128xf32, #tpu.memory_space<any>> -> memref<1x128xf32, #tpu.memory_space<any>>
      %139 = tpu.memref_squeeze %138 : memref<1x128xf32, #tpu.memory_space<any>> -> memref<128xf32, #tpu.memory_space<any>>
      %c0_i32_91 = arith.constant 0 : i32
      %140 = tpu.memref_slice %arg6[%c0_i32_89, %c0_i32_91] : memref<128x128xf32, #tpu.memory_space<vmem>> -> memref<1x128xf32, #tpu.memory_space<vmem>>
      %141 = tpu.memref_squeeze %140 : memref<1x128xf32, #tpu.memory_space<vmem>> -> memref<128xf32, #tpu.memory_space<vmem>>
      %142 = tpu.memref_slice %arg7[%137] : memref<32x!tpu.dma_semaphore, #tpu.memory_space<semaphore_mem>> -> memref<1x!tpu.dma_semaphore, #tpu.memory_space<semaphore_mem>>
      %143 = tpu.memref_squeeze %142 : memref<1x!tpu.dma_semaphore, #tpu.memory_space<semaphore_mem>> -> memref<!tpu.dma_semaphore, #tpu.memory_space<semaphore_mem>>
      tpu.wait_dma2 semaphore(%143 : memref<!tpu.dma_semaphore, #tpu.memory_space<semaphore_mem>>) src(%139 : memref<128xf32, #tpu.memory_space<any>>) dst(%141 : memref<128xf32, #tpu.memory_space<vmem>>)
      %144 = tpu.assume_multiple %7, 8 : i32
      %145 = arith.index_cast %144 : i32 to index
      %c0 = arith.constant 0 : index
      %146 = vector.load %arg6[%145, %c0] : memref<128x128xf32, #tpu.memory_space<vmem>>, vector<8x128xf32>
      %147 = arith.index_cast %144 : i32 to index
      %c0_92 = arith.constant 0 : index
      %148 = vector.load %arg4[%147, %c0_92] : memref<128x128xf32, #tpu.memory_space<vmem>>, vector<8x128xf32>
      %149 = arith.addf %146, %148 : vector<8x128xf32>
      %c0_93 = arith.constant 0 : index
      %150 = arith.index_cast %144 : i32 to index
      %c0_94 = arith.constant 0 : index
      %151 = vector.load %arg5[%c0_93, %150, %c0_94] : memref<1x128x128xf32, #tpu.memory_space<vmem>>, vector<1x8x128xf32>
      %152 = vector.shape_cast %151 : vector<1x8x128xf32> to vector<8x128xf32>
      %153 = vector.shape_cast %149 : vector<8x128xf32> to vector<1x8x128xf32>
      tpu.vector_store %arg5[%c0_93, %150, %c0_94], %153 {strides = array<i32>} : memref<1x128x128xf32, #tpu.memory_space<vmem>>, vector<1x8x128xf32>,
    }
    %c4_i32_6 = arith.constant 4 : i32
    return
  }
  func.func @transform_1(%arg0: i32, %arg1: i32, %arg2: memref<2x128xi32, #tpu.memory_space<smem>>) -> (i32, i32) {
    %c0_i32 = arith.constant 0 : i32
    %c0_i32_0 = arith.constant 0 : i32
    return %arg0, %c0_i32 : i32, i32
  }
  func.func @transform_2(%arg0: i32, %arg1: i32, %arg2: memref<2x128xi32, #tpu.memory_space<smem>>) -> (i32, i32, i32) {
    %c0_i32 = arith.constant 0 : i32
    %c0_i32_0 = arith.constant 0 : i32
    return %arg1, %arg0, %c0_i32 : i32, i32, i32
  }
}

</mosaic_0001>

<bundles_post_ra>
// kernel: tpu_custom_call.1
= control target key start
LH: loop header
LB: loop body
LE: loop exit
PB: predicated region body
PF: predicated region fallthrough
CT: control target
= control target key end

     0   :  { %s1896_s12 = smov [#allocation5]   ;;  %s2343_s0 = inlined_call_operand.hbm [shape: s32[2,128], index: 0, kind: input, shape index: {}]   ;;  %s2344_s1 = inlined_call_operand.hbm [shape: f32[384,128], index: 1, kind: input, shape index: {}]   ;;  %s2345_s2 = inlined_call_operand.hbm [shape: f32[128,128], index: 2, kind: input, shape index: {}]   ;;  %s2346_s3 = inlined_call_operand.hbm [shape: f32[2,128,128], index: 3, kind: output, shape index: {}]  }
   0x1   :  { %2366 = sst [smem:[#allocation64_spill]] %s2345_s2 }
   0x2   :  { %2367 = sst [smem:[#allocation65_spill]] %s2346_s3 }
   0x3   :  { %9 = dma.hbm_to_smem %s2343_s0, 32, %s1896_s12, [#allocation4] }
   0x4   :  { %1818 = dma.done.wait [#allocation4], 32 }
   0x5   :  { %1819 = vsyncadd [#allocation4], 4294967264 }
   0x6   :  { %11 = sfence }
   0x7   :  { %12 = vsyncpa [#allocation7], 0 }
   0x8   :  { %13 = vsyncpa [#allocation8], 0 }
   0x9   :  { %15 = vsyncpa [#allocation8 + $0x1], 0  ;;  %s1927_s15 = smov 0   ;;  %s1929_s16 = smov 0  }
   0xa   :  { %s1931_s17 = smov 0   ;;  %s1933_s18 = smov 0  }
   0xb   :  { %s1935_s19 = smov 0   ;;  %s1937_s20 = smov 0  }
   0xc LB: > { %2368 = sst [smem:[#allocation49_spill]] %s1862_s15  ;;  %s1210_s0 = sadd.s32 4294967295, %s1882_s20   ;;  %s1882_s20 = sphi %s1937_s20, %s21_s20   ;;  %s1878_s19 = sphi %s1935_s19, %s2408_s19   ;;  %s1874_s18 = sphi %s1933_s18, %s2407_s18   ;;  %s1870_s17 = sphi %s1931_s17, %s2406_s17   ;;  %s1866_s16 = sphi %s1929_s16, %s2405_s16   ;;  %s1862_s15 = sphi %s1927_s15, %s2404_s15  }
   0xd   : > { %2369 = sst [smem:[#allocation50_spill]] %s1866_s16  ;;  %s1211_s21 = sadd.s32 4294967294, %s1882_s20  }
   0xe   : > { %2370 = sst [smem:[#allocation51_spill]] %s1870_s17  ;;  %s30_s22 = sadd.s32 1, %s1878_s19 }
   0xf   : > { %2371 = sst [smem:[#allocation52_spill]] %s1874_s18  ;;  %s68_s23 = sadd.s32 1, %s1870_s17 }
  0x10   : > { %2372 = sst [smem:[#allocation53_spill]] %s1878_s19  ;;  %p31_p0 = scmp.ge.s32.totalorder %s30_s22, 2 }
  0x11   : > { %2373 = sst [smem:[#allocation54_spill]] %s1882_s20  ;;  %p78_p1 = scmp.ne.s32.totalorder %s1870_s17, %s1866_s16 }
  0x12   : > { %p79_p2 = scmp.eq.s32.totalorder %s1210_s0, 1  ;;  %p84_p3 = scmp.ne.s32.totalorder %s1866_s16, %s1862_s15 }
  0x13   : > { %s2410_s22 = smov (%p31_p0, %s30_s22), 0  ;;  %p85_p5 = scmp.eq.s32.totalorder %s1211_s21, 1 }
  0x14   : > { %2374 = sst [smem:[#allocation55_spill]] %s2410_s22  ;;  %p1967_p4 = por %p79_p2, %p78_p1 }
  0x15   : > { %s63_s25 = ssub.s32 %s1878_s19, %s2410_s22  ;;  %p1212_p6 = scmp.ge.s32.totalorder %s1882_s20, 1 }
  0x16   : > { %s2375_s24 = scalar_select %p1967_p4, 1, 0 }
  0x17   : > { %p66_p7 = scmp.eq.s32.totalorder %s63_s25, 0  ;;  %p1974_p8 = por %p85_p5, %p84_p3 }
  0x18   : > { %2376 = sst [smem:[#allocation56_spill]] %s2375_s24  ;;  %p92_p9 = scmp.lt.s32.totalorder %s1882_s20, 3 }
  0x19   : > { %s2377_s26 = scalar_select %p1974_p8, 1, 0 }
  0x1a   : > { %s1980_s27 = scalar_select %p66_p7, %s1870_s17, %s68_s23  }
  0x1b   : > { %2378 = sst [smem:[#allocation57_spill]] %s2377_s26  ;;  %p1982_p10 = pnand %p1212_p6, %p92_p9 }
  0x1c   : > { %2379 = sst [smem:[#allocation58_spill]] %s1980_s27  ;;  %p1986_p11 = scmp.eq.s32.totalorder %s1210_s0, 0 }
  0x1d   : > { %p1435_p12 = pneg %p1982_p10  ;;  %s1897_s30 = smov [#allocation6]  }
  0x1e   : > { %s107_s4 = sshll.u32 %s1897_s30, 4  ;;  %s108_s4 = int_to_ptr.vmem [resolvable:$true] %s107_s4 }
  0x1f   : > { %p1436_p13 = pnand %p1986_p11, %p1435_p12  ;;  %s1543_s5 = scalar_lea.vmem %s108_s4, 2048 }
  0x20   : > { %p1544_p1 = scmp.ne.s32.totalorder %s108_s4, %s1543_s5  ;;  %p1551_p5 = scmp.lt.s32.totalorder %s108_s4, %s108_s4 }
  0x21   : > { %p1534_p0 = pneg %p1436_p13  ;;  %p1552_p6 = scmp.lt.s32.totalorder %s1543_s5, %s1543_s5 }
  0x23   : > { %p1546_p2 = pnand %p1544_p1, %p1534_p0  ;;  %p1553_p7 = por %p1552_p6, %p1551_p5 }
  0x25   : > { %p1547_p3 = pneg %p1546_p2 }
  0x27   : > { %p1554_p9 = pnand %p1553_p7, %p1547_p3 }
  0x29   : > { %1557 = shalt.err (!%p1554_p9)
}
  0x2a   : > { %s1898_s6 = smov 128   ;;  %s1899_s7 = smov 8  }
  0x2b   : > { %s2382_s2 = sld [smem:[#allocation64_spill]] }
  0x2d   : > { %123 = sbr.rel (%p1982_p10) target bundleno = 556 (0x22c), region = 24 }
  0x31   : > { %1438 = dma.hbm_to_vmem [thread:$0]  (!%p1436_p13), %s2382_s2, 2048, %s108_s4, [#allocation7], %s1898_s6, %s1898_s6, %s1899_s7  }
  0x32   : > { %1821 = dma.done.wait (%p1986_p11), [#allocation7], 2048  }
  0x33   : > { %1823 = vsyncadd (%p1986_p11), [#allocation7], 4294965248  ;;  %s2347_s10 = sand.u32 1, %s1866_s16   ;;  %s2008_s13 = smov 0  }
  0x34   : > { %s1216_s11 = sshll.u32 %s2347_s10, 7 }
  0x35   : > { %s2006_s12 = scalar_lea.vmem [#allocation9], %s1216_s11 }
  0x36   : > { %2383 = sst [smem:[#allocation59_spill]] %s2006_s12 }
  0x37 LB: >> { %s148_s14 = sshra.s32 %s1886_s13, 7  ;;  %s153_s0 = sand.u32 127, %s1886_s13  ;;  %s1886_s13 = sphi %s2008_s13, %s146_s13  }
  0x38   : >> { %s150_s21 = sadd.s32 %s1874_s18, %s148_s14  ;;  %p160_p10 = scmp.lt.s32.totalorder %s1886_s13, 0 }
  0x39   : >> { %s1217_s23 = sshll.u32 %s150_s21, 7  ;;  %s161_s25 = ssub.s32 0, %s1886_s13 }
  0x3a   : >> { %s154_s28 = sadd.s32 %s1217_s23, %s153_s0  ;;  %s1223_s29 = smin.u32 %s1886_s13, %s161_s25 }
  0x3b   : >> { %s155_s30 = sld [smem:[#allocation5 + %s154_s28]]  ;;  %s163_s4 = sand.u32 31, %s1223_s29  }
  0x3c   : >> { %s164_s5 = ssub.s32 0, %s163_s4  ;;  %s174_s7 = scalar_lea.vmem [#allocation2], %s1886_s13 }
  0x3d   : >> { %s2412_s5 = smov (!%p160_p10, %s164_s5), %s163_s4  ;;  %s183_s8 = sshll.u32 %s174_s7, 4  ;;  %s184_s8 = int_to_ptr.vmem [resolvable:$true] %s183_s8 }
  0x3e   : >> { %p1225_p11 = scmp.lt.s32.totalorder %s2412_s5, 0  ;;  %s170_s6 = sadd.s32 32, %s2412_s5 }
  0x3f   : >> { %s2026_s29 = scalar_lea.hbm %s2344_s1, 6144 }
  0x40   : >> { %s2414_s6 = smov (!%p1225_p11, %s170_s6), %s2412_s5 }
  0x41   : >> { %p156_p12 = scmp.gt.s32.totalorder %s155_s30, 0  ;;  %p1218_p13 = scmp.lt.s32.totalorder %s155_s30, 383 }
  0x42   : >> { %s175_s21 = scalar_lea.sflag [#allocation3], %s2414_s6 }
  0x43   : >> { %s2416_s30 = smov (!%p156_p12, %s155_s30), 0 }
  0x44   : >> { %s2418_s30 = smov (!%p1218_p13, %s2416_s30), 383 }
  0x45   : >> { %s1226_s9 = sshll.u32 %s2418_s30, 4 }
  0x46   : >> { %s173_s0 = scalar_lea.hbm %s2344_s1, %s1226_s9 }
  0x47   : >> { %s1558_s23 = scalar_lea.hbm %s173_s0, 16  ;;  %p1561_p1 = scmp.lt.s32.totalorder %s173_s0, %s2344_s1 }
  0x48   : >> { %p1559_p0 = scmp.ne.s32.totalorder %s173_s0, %s1558_s23  ;;  %p1562_p2 = scmp.lt.s32.totalorder %s2026_s29, %s1558_s23 }
  0x4a   : >> { %p1563_p3 = por %p1562_p2, %p1561_p1 }
  0x4c   : >> { %p1564_p5 = pnand %p1563_p3, %p1559_p0 }
  0x4e   : >> { %1567 = shalt.err (!%p1564_p5)  }
  0x4f   : >> { %s1568_s30 = scalar_lea.vmem %s184_s8, 16  ;;  %s1900_s5 = smov [#allocation2]  }
  0x50   : >> { %p1569_p6 = scmp.ne.s32.totalorder %s184_s8, %s1568_s30  ;;  %s1570_s6 = sshll.u32 %s1900_s5, 4  ;;  %s2032_s6 = int_to_ptr.vmem [resolvable:$false] %s1570_s6 }
  0x51   : >> { %s2035_s9 = scalar_lea.vmem %s2032_s6, 2048  ;;  %p1573_p7 = scmp.lt.s32.totalorder %s184_s8, %s2032_s6 }
  0x52   : >> { %p1574_p9 = scmp.lt.s32.totalorder %s2035_s9, %s1568_s30 }
  0x54   : >> { %p1575_p10 = por %p1574_p9, %p1573_p7 }
  0x56   : >> { %p1576_p11 = pnand %p1575_p10, %p1569_p6 }
  0x58   : >> { %1579 = shalt.err (!%p1576_p11)  }
  0x59   : >> { %186 = dma.hbm_to_vmem [thread:$0]  %s173_s0, 16, %s184_s8, %s175_s21 }
  0x5a   : >> { %s146_s13 = sadd.s32 1, %s1886_s13  }
  0x5b   : >> { %p143_p12 = scmp.ge.s32.totalorder %s146_s13, 32  }
  0x5c   : > { %s2042_s11 = smov (%p143_p12), 0  }
  0x5d   : > { %145 = sbr.rel (!%p143_p12) target bundleno = 55 (0x37), region = 199 }
  0x62 LB: >> { %s2384_s18 = sld [smem:[#allocation52_spill]]  ;;  %s2048_s14 = sshll.u32 %s1890_s11, 3  ;;  %s1890_s11 = sphi %s2042_s11, %s192_s11  }
  0x63   : >> { %2385 = sst [smem:[#allocation60_spill]] %s1890_s11  ;;  %s2051_s8 = sadd.s32 32, %s2048_s14 }
  0x64   : >> { %s2054_s13 = sadd.s32 33, %s2048_s14  ;;  %s196_s0 = sshra.s32 %s2051_s8, 7 }
  0x65   : >> { %s201_s21 = sand.u32 127, %s2051_s8  ;;  %s210_s25 = sshra.s32 %s2054_s13, 7 }
  0x66   : >> { %s215_s10 = sand.u32 127, %s2054_s13  ;;  %s2063_s22 = sadd.s32 34, %s2048_s14 }
  0x67   : >> { %s224_s27 = sshra.s32 %s2063_s22, 7  ;;  %s229_s26 = sand.u32 127, %s2063_s22 }
  0x68   : >> { %s198_s23 = sadd.s32 %s2384_s18, %s196_s0  ;;  %s212_s4 = sadd.s32 %s2384_s18, %s210_s25 }
  0x69   : >> { %s1228_s28 = sshll.u32 %s198_s23, 7  ;;  %s1234_s30 = sshll.u32 %s212_s4, 7 }
  0x6a   : >> { %s202_s7 = sadd.s32 %s1228_s28, %s201_s21  ;;  %s216_s2 = sadd.s32 %s1234_s30, %s215_s10 }
  0x6b   : >> { %s203_s5 = sld [smem:[#allocation5 + %s202_s7]]  ;;  %s226_s17 = sadd.s32 %s2384_s18, %s224_s27 }
  0x6c   : >> { %s217_s19 = sld [smem:[#allocation5 + %s216_s2]]  ;;  %s1240_s15 = sshll.u32 %s226_s17, 7 }
  0x6d   : >> { %s2069_s20 = sadd.s32 35, %s2048_s14  ;;  %s230_s0 = sadd.s32 %s1240_s15, %s229_s26 }
  0x6e   : >> { %s238_s21 = sshra.s32 %s2069_s20, 7  ;;  %s231_s23 = sld [smem:[#allocation5 + %s230_s0]] }
  0x6f   : >> { %s240_s10 = sadd.s32 %s2384_s18, %s238_s21  ;;  %s243_s17 = sand.u32 127, %s2069_s20 }
  0x70   : >> { %s1246_s2 = sshll.u32 %s240_s10, 7  ;;  %s2079_s26 = sadd.s32 36, %s2048_s14 }
  0x71   : >> { %p204_p13 = scmp.gt.s32.totalorder %s203_s5, 0  ;;  %p1229_p0 = scmp.lt.s32.totalorder %s203_s5, 383 }
  0x72   : >> { %p218_p1 = scmp.gt.s32.totalorder %s217_s19, 0  ;;  %p1235_p2 = scmp.lt.s32.totalorder %s217_s19, 383 }
  0x73   : >> { %s2420_s5 = smov (!%p204_p13, %s203_s5), 0  ;;  %s244_s15 = sadd.s32 %s1246_s2, %s243_s17 }
  0x74   : >> { %s2422_s5 = smov (!%p1229_p0, %s2420_s5), 383  ;;  %s2424_s19 = smov (!%p218_p1, %s217_s19), 0 }
  0x75   : >> { %s2426_s19 = smov (!%p1235_p2, %s2424_s19), 383  ;;  %p232_p3 = scmp.gt.s32.totalorder %s231_s23, 0 }
  0x76   : >> { %p1241_p5 = scmp.lt.s32.totalorder %s231_s23, 383  ;;  %s245_s27 = sld [smem:[#allocation5 + %s244_s15]] }
  0x77   : >> { %s2428_s23 = smov (!%p232_p3, %s231_s23), 0  ;;  %s252_s25 = sshra.s32 %s2079_s26, 7 }
  0x78   : >> { %s2430_s23 = smov (!%p1241_p5, %s2428_s23), 383  ;;  %s254_s28 = sadd.s32 %s2384_s18, %s252_s25 }
  0x79   : >> { %s257_s4 = sand.u32 127, %s2079_s26  ;;  %s1252_s7 = sshll.u32 %s254_s28, 7 }
  0x7a   : >> { %s2087_s30 = sadd.s32 37, %s2048_s14  ;;  %s258_s0 = sadd.s32 %s1252_s7, %s257_s4 }
  0x7b   : >> { %s266_s21 = sshra.s32 %s2087_s30, 7  ;;  %s259_s10 = sld [smem:[#allocation5 + %s258_s0]] }
  0x7c   : >> { %s268_s2 = sadd.s32 %s2384_s18, %s266_s21  ;;  %p246_p6 = scmp.gt.s32.totalorder %s245_s27, 0 }
  0x7d   : >> { %p1247_p7 = scmp.lt.s32.totalorder %s245_s27, 383  ;;  %s1258_s17 = sshll.u32 %s268_s2, 7 }
  0x7e   : >> { %s271_s15 = sand.u32 127, %s2087_s30  ;;  %s2432_s27 = smov (!%p246_p6, %s245_s27), 0 }
  0x7f   : >> { %s272_s3 = sadd.s32 %s1258_s17, %s271_s15  ;;  %s2093_s24 = sadd.s32 38, %s2048_s14 }
  0x80   : >> { %2386 = sst [smem:[#allocation61_spill]] %s2093_s24  ;;  %s2434_s27 = smov (!%p1247_p7, %s2432_s27), 383 }
  0x81   : >> { %p260_p9 = scmp.gt.s32.totalorder %s259_s10, 0  ;;  %p1253_p10 = scmp.lt.s32.totalorder %s259_s10, 383 }
  0x82   : >> { %s273_s25 = sld [smem:[#allocation5 + %s272_s3]]  ;;  %s280_s28 = sshra.s32 %s2093_s24, 7 }
  0x83   : >> { %s2436_s10 = smov (!%p260_p9, %s259_s10), 0  ;;  %s282_s4 = sadd.s32 %s2384_s18, %s280_s28 }
  0x84   : >> { %s285_s7 = sand.u32 127, %s2093_s24  ;;  %s2438_s10 = smov (!%p1253_p10, %s2436_s10), 383 }
  0x85   : >> { %s1264_s0 = sshll.u32 %s282_s4, 7  ;;  %s2103_s21 = sadd.s32 39, %s2048_s14 }
  0x86   : >> { %2387 = sst [smem:[#allocation62_spill]] %s2103_s21  ;;  %s286_s2 = sadd.s32 %s1264_s0, %s285_s7 }
  0x87   : >> { %s294_s17 = sshra.s32 %s2103_s21, 7  ;;  %s287_s15 = sld [smem:[#allocation5 + %s286_s2]] }
  0x88   : >> { %p274_p11 = scmp.gt.s32.totalorder %s273_s25, 0  ;;  %p1259_p12 = scmp.lt.s32.totalorder %s273_s25, 383 }
  0x89   : >> { %s296_s3 = sadd.s32 %s2384_s18, %s294_s17  ;;  %s299_s28 = sand.u32 127, %s2103_s21 }
  0x8a   : >> { %s2440_s25 = smov (!%p274_p11, %s273_s25), 0  ;;  %s1270_s16 = sshll.u32 %s296_s3, 7 }
  0x8b   : >> { %s2442_s25 = smov (!%p1259_p12, %s2440_s25), 383  ;;  %s300_s11 = sadd.s32 %s1270_s16, %s299_s28 }
  0x8c   : >> { %s301_s12 = sld [smem:[#allocation5 + %s300_s11]]  ;;  %s307_s4 = ssub.s32 0, %s2048_s14 }
  0x8d   : >> { %p288_p13 = scmp.gt.s32.totalorder %s287_s15, 0  ;;  %p1265_p0 = scmp.lt.s32.totalorder %s287_s15, 383 }
  0x8e   : >> { %s1276_s24 = smin.u32 %s2048_s14, %s307_s4  ;;  %p306_p1 = scmp.lt.s32.totalorder %s2048_s14, 0 }
  0x8f   : >> { %s2444_s15 = smov (!%p288_p13, %s287_s15), 0  ;;  %s309_s7 = sand.u32 31, %s1276_s24  }
  0x90   : >> { %s2446_s15 = smov (!%p1265_p0, %s2444_s15), 383  ;;  %s310_s0 = ssub.s32 0, %s309_s7 }
  0x91   : >> { %s2450_s0 = smov (!%p306_p1, %s310_s0), %s309_s7 }
  0x92   : >> { %p302_p2 = scmp.gt.s32.totalorder %s301_s12, 0  ;;  %p1271_p3 = scmp.lt.s32.totalorder %s301_s12, 383 }
  0x93   : >> { %p1278_p5 = scmp.lt.s32.totalorder %s2450_s0, 0  ;;  %s316_s2 = sadd.s32 32, %s2450_s0 }
  0x94   : >> { %s2448_s12 = smov (!%p302_p2, %s301_s12), 0 }
  0x95   : >> { %s2452_s12 = smov (!%p1271_p3, %s2448_s12), 383  ;;  %s2454_s2 = smov (!%p1278_p5, %s316_s2), %s2450_s0 }
  0x96   : >> { %2388 = sst [smem:[#allocation63_spill]] %s2452_s12  ;;  %s318_s16 = scalar_lea.sflag [#allocation3], %s2454_s2 }
  0x97   : >> { %1824 = dma.done.wait %s318_s16, 16 }
  0x98   : >> { %1825 = vsyncadd %s318_s16, 4294967280  ;;  %p321_p6 = scmp.lt.s32.totalorder %s2051_s8, 0  ;;  %s322_s24 = ssub.s32 0, %s2051_s8 }
  0x99   : >> { %s1279_s11 = smin.u32 %s322_s24, %s2051_s8  ;;  %s1282_s17 = sshll.u32 %s2422_s5, 4 }
  0x9a   : >> { %s324_s3 = sand.u32 31, %s1279_s11   ;;  %s2124_s7 = scalar_lea.hbm %s2344_s1, %s1282_s17 }
  0x9b   : >> { %s325_s0 = ssub.s32 0, %s324_s3  ;;  %s2127_s2 = scalar_lea.vmem [#allocation2], %s2048_s14 }
  0x9c   : >> { %s2456_s0 = smov (!%p321_p6, %s325_s0), %s324_s3  ;;  %s1078_s16 = scalar_lea.vmem %s2127_s2, 32 [#allocation2] }
  0x9d   : >> { %s348_s18 = sadd.s32 1, %s2048_s14  ;;  %p1281_p7 = scmp.lt.s32.totalorder %s2456_s0, 0 }
  0x9e   : >> { %s331_s8 = sadd.s32 32, %s2456_s0  ;;  %s344_s5 = sshll.u32 %s1078_s16, 4  ;;  %s345_s5 = int_to_ptr.vmem [resolvable:$true] %s344_s5 }
  0x9f   : >> { %p349_p9 = scmp.lt.s32.totalorder %s348_s18, 0  ;;  %s2458_s8 = smov (!%p1281_p7, %s331_s8), %s2456_s0 }
  0xa0   : >> { %s350_s24 = ssub.s32 0, %s348_s18  ;;  %s336_s17 = scalar_lea.sflag [#allocation3], %s2458_s8 }
  0xa1   : >> { %s1284_s11 = smin.u32 %s350_s24, %s348_s18  ;;  %s1580_s28 = scalar_lea.hbm %s2124_s7, 16 }
  0xa2   : >> { %p1581_p10 = scmp.ne.s32.totalorder %s2124_s7, %s1580_s28  ;;  %p1583_p11 = scmp.lt.s32.totalorder %s2124_s7, %s2344_s1 }
  0xa3   : >> { %p1584_p12 = scmp.lt.s32.totalorder %s2026_s29, %s1580_s28 }
  0xa5   : >> { %p1585_p13 = por %p1584_p12, %p1583_p11 }
  0xa7   : >> { %p1586_p0 = pnand %p1585_p13, %p1581_p10 }
  0xa9   : >> { %1589 = shalt.err (!%p1586_p0)  }
  0xaa   : >> { %s1590_s3 = scalar_lea.vmem %s345_s5, 16  ;;  %p1595_p2 = scmp.lt.s32.totalorder %s345_s5, %s2032_s6 }
  0xab   : >> { %p1591_p1 = scmp.ne.s32.totalorder %s345_s5, %s1590_s3  ;;  %p1596_p3 = scmp.lt.s32.totalorder %s2035_s9, %s1590_s3 }
  0xad   : >> { %p1597_p5 = por %p1596_p3, %p1595_p2 }
  0xaf   : >> { %p1598_p6 = pnand %p1597_p5, %p1591_p1 }
  0xb1   : >> { %1601 = shalt.err (!%p1598_p6)  }
  0xb2   : >> { %347 = dma.hbm_to_vmem [thread:$0]  %s2124_s7, 16, %s345_s5, %s336_s17 }
  0xb3   : >> { %s352_s0 = sand.u32 31, %s1284_s11  }
  0xb4   : >> { %s353_s16 = ssub.s32 0, %s352_s0 }
  0xb5   : >> { %s2460_s16 = smov (!%p349_p9, %s353_s16), %s352_s0 }
  0xb6   : >> { %p1286_p7 = scmp.lt.s32.totalorder %s2460_s16, 0  ;;  %s359_s12 = sadd.s32 32, %s2460_s16 }
  0xb8   : >> { %s2462_s12 = smov (!%p1286_p7, %s359_s12), %s2460_s16 }
  0xb9   : >> { %s361_s8 = scalar_lea.sflag [#allocation3], %s2462_s12 }
  0xba   : >> { %1826 = dma.done.wait %s361_s8, 16 }
  0xbb   : >> { %1827 = vsyncadd %s361_s8, 4294967280  ;;  %p364_p10 = scmp.lt.s32.totalorder %s2054_s13, 0  ;;  %s365_s24 = ssub.s32 0, %s2054_s13 }
  0xbc   : >> { %s1287_s28 = smin.u32 %s365_s24, %s2054_s13  ;;  %s1290_s5 = sshll.u32 %s2426_s19, 4 }
  0xbd   : >> { %s367_s7 = sand.u32 31, %s1287_s28   ;;  %s1085_s18 = scalar_lea.vmem %s2127_s2, 33 [#allocation2] }
  0xbe   : >> { %s368_s11 = ssub.s32 0, %s367_s7  ;;  %s387_s17 = sshll.u32 %s1085_s18, 4  ;;  %s388_s17 = int_to_ptr.vmem [resolvable:$true] %s387_s17 }
  0xbf   : >> { %s2464_s11 = smov (!%p364_p10, %s368_s11), %s367_s7  ;;  %s391_s4 = sadd.s32 2, %s2048_s14 }
  0xc0   : >> { %p1289_p9 = scmp.lt.s32.totalorder %s2464_s11, 0  ;;  %s374_s3 = sadd.s32 32, %s2464_s11 }
  0xc1   : >> { %s377_s12 = scalar_lea.hbm %s2344_s1, %s1290_s5  ;;  %p392_p11 = scmp.lt.s32.totalorder %s391_s4, 0 }
  0xc2   : >> { %s2466_s3 = smov (!%p1289_p9, %s374_s3), %s2464_s11  ;;  %s393_s8 = ssub.s32 0, %s391_s4 }
  0xc3   : >> { %s1292_s21 = smin.u32 %s393_s8, %s391_s4  ;;  %s379_s13 = scalar_lea.sflag [#allocation3], %s2466_s3 }
  0xc4   : >> { %s1602_s24 = scalar_lea.hbm %s377_s12, 16  ;;  %p1605_p13 = scmp.lt.s32.totalorder %s377_s12, %s2344_s1 }
  0xc5   : >> { %p1603_p12 = scmp.ne.s32.totalorder %s377_s12, %s1602_s24  ;;  %p1606_p0 = scmp.lt.s32.totalorder %s2026_s29, %s1602_s24 }
  0xc7   : >> { %p1607_p1 = por %p1606_p0, %p1605_p13 }
  0xc9   : >> { %p1608_p2 = pnand %p1607_p1, %p1603_p12 }
  0xcb   : >> { %1611 = shalt.err (!%p1608_p2)  }
  0xcc   : >> { %s1612_s7 = scalar_lea.vmem %s388_s17, 16  ;;  %p1617_p5 = scmp.lt.s32.totalorder %s388_s17, %s2032_s6 }
  0xcd   : >> { %p1613_p3 = scmp.ne.s32.totalorder %s388_s17, %s1612_s7  ;;  %p1618_p6 = scmp.lt.s32.totalorder %s2035_s9, %s1612_s7 }
  0xcf   : >> { %p1619_p7 = por %p1618_p6, %p1617_p5 }
  0xd1   : >> { %p1620_p10 = pnand %p1619_p7, %p1613_p3 }
  0xd3   : >> { %1623 = shalt.err (!%p1620_p10)  }
  0xd4   : >> { %390 = dma.hbm_to_vmem [thread:$0]  %s377_s12, 16, %s388_s17, %s379_s13 }
  0xd5   : >> { %s395_s5 = sand.u32 31, %s1292_s21  }
  0xd6   : >> { %s396_s11 = ssub.s32 0, %s395_s5 }
  0xd7   : >> { %s2468_s11 = smov (!%p392_p11, %s396_s11), %s395_s5 }
  0xd8   : >> { %p1294_p9 = scmp.lt.s32.totalorder %s2468_s11, 0  ;;  %s402_s18 = sadd.s32 32, %s2468_s11 }
  0xda   : >> { %s2470_s18 = smov (!%p1294_p9, %s402_s18), %s2468_s11 }
  0xdb   : >> { %s404_s3 = scalar_lea.sflag [#allocation3], %s2470_s18 }
  0xdc   : >> { %1828 = dma.done.wait %s404_s3, 16 }
  0xdd   : >> { %1829 = vsyncadd %s404_s3, 4294967280  ;;  %p407_p12 = scmp.lt.s32.totalorder %s2063_s22, 0  ;;  %s408_s0 = ssub.s32 0, %s2063_s22 }
  0xde   : >> { %s1295_s16 = smin.u32 %s408_s0, %s2063_s22  ;;  %s1298_s21 = sshll.u32 %s2430_s23, 4 }
  0xdf   : >> { %s410_s17 = sand.u32 31, %s1295_s16   ;;  %s1092_s4 = scalar_lea.vmem %s2127_s2, 34 [#allocation2] }
  0xe0   : >> { %s411_s12 = ssub.s32 0, %s410_s17  ;;  %s430_s8 = sshll.u32 %s1092_s4, 4  ;;  %s431_s8 = int_to_ptr.vmem [resolvable:$true] %s430_s8 }
  0xe1   : >> { %s2472_s12 = smov (!%p407_p12, %s411_s12), %s410_s17  ;;  %s434_s13 = sadd.s32 3, %s2048_s14 }
  0xe2   : >> { %p1297_p11 = scmp.lt.s32.totalorder %s2472_s12, 0  ;;  %s417_s24 = sadd.s32 32, %s2472_s12 }
  0xe3   : >> { %s420_s7 = scalar_lea.hbm %s2344_s1, %s1298_s21  ;;  %p435_p13 = scmp.lt.s32.totalorder %s434_s13, 0 }
  0xe4   : >> { %s2474_s24 = smov (!%p1297_p11, %s417_s24), %s2472_s12  ;;  %s436_s5 = ssub.s32 0, %s434_s13 }
  0xe5   : >> { %s1300_s11 = smin.u32 %s436_s5, %s434_s13  ;;  %s422_s22 = scalar_lea.sflag [#allocation3], %s2474_s24 }
  0xe6   : >> { %s1624_s18 = scalar_lea.hbm %s420_s7, 16  ;;  %p1627_p1 = scmp.lt.s32.totalorder %s420_s7, %s2344_s1 }
  0xe7   : >> { %p1625_p0 = scmp.ne.s32.totalorder %s420_s7, %s1624_s18  ;;  %p1628_p2 = scmp.lt.s32.totalorder %s2026_s29, %s1624_s18 }
  0xe9   : >> { %p1629_p3 = por %p1628_p2, %p1627_p1 }
  0xeb   : >> { %p1630_p5 = pnand %p1629_p3, %p1625_p0 }
  0xed   : >> { %1633 = shalt.err (!%p1630_p5)  }
  0xee   : >> { %s1634_s0 = scalar_lea.vmem %s431_s8, 16  ;;  %p1639_p7 = scmp.lt.s32.totalorder %s431_s8, %s2032_s6 }
  0xef   : >> { %p1635_p6 = scmp.ne.s32.totalorder %s431_s8, %s1634_s0  ;;  %p1640_p10 = scmp.lt.s32.totalorder %s2035_s9, %s1634_s0 }
  0xf1   : >> { %p1641_p9 = por %p1640_p10, %p1639_p7 }
  0xf3   : >> { %p1642_p12 = pnand %p1641_p9, %p1635_p6 }
  0xf5   : >> { %1645 = shalt.err (!%p1642_p12)  }
  0xf6   : >> { %433 = dma.hbm_to_vmem [thread:$0]  %s420_s7, 16, %s431_s8, %s422_s22 }
  0xf7   : >> { %s438_s16 = sand.u32 31, %s1300_s11  }
  0xf8   : >> { %s439_s17 = ssub.s32 0, %s438_s16 }
  0xf9   : >> { %s2476_s17 = smov (!%p435_p13, %s439_s17), %s438_s16 }
  0xfa   : >> { %p1302_p11 = scmp.lt.s32.totalorder %s2476_s17, 0  ;;  %s445_s21 = sadd.s32 32, %s2476_s17 }
  0xfc   : >> { %s2478_s21 = smov (!%p1302_p11, %s445_s21), %s2476_s17 }
  0xfd   : >> { %s447_s12 = scalar_lea.sflag [#allocation3], %s2478_s21 }
  0xfe   : >> { %1830 = dma.done.wait %s447_s12, 16 }
  0xff   : >> { %1831 = vsyncadd %s447_s12, 4294967280  ;;  %p450_p0 = scmp.lt.s32.totalorder %s2069_s20, 0  ;;  %s451_s4 = ssub.s32 0, %s2069_s20 }
 0x100   : >> { %s1303_s24 = smin.u32 %s451_s4, %s2069_s20  ;;  %s1306_s19 = sshll.u32 %s2434_s27, 4 }
 0x101   : >> { %s453_s8 = sand.u32 31, %s1303_s24   ;;  %s1099_s13 = scalar_lea.vmem %s2127_s2, 35 [#allocation2] }
 0x102   : >> { %s454_s28 = ssub.s32 0, %s453_s8  ;;  %s473_s7 = sshll.u32 %s1099_s13, 4  ;;  %s474_s7 = int_to_ptr.vmem [resolvable:$true] %s473_s7 }
 0x103   : >> { %s2480_s28 = smov (!%p450_p0, %s454_s28), %s453_s8  ;;  %s477_s5 = sadd.s32 4, %s2048_s14 }
 0x104   : >> { %p1305_p13 = scmp.lt.s32.totalorder %s2480_s28, 0  ;;  %s460_s11 = sadd.s32 32, %s2480_s28 }
 0x105   : >> { %s463_s23 = scalar_lea.hbm %s2344_s1, %s1306_s19  ;;  %p478_p1 = scmp.lt.s32.totalorder %s477_s5, 0 }
 0x106   : >> { %s2482_s11 = smov (!%p1305_p13, %s460_s11), %s2480_s28  ;;  %s479_s3 = ssub.s32 0, %s477_s5 }
 0x107   : >> { %s1308_s0 = smin.u32 %s479_s3, %s477_s5  ;;  %s465_s20 = scalar_lea.sflag [#allocation3], %s2482_s11 }
 0x108   : >> { %s1646_s16 = scalar_lea.hbm %s463_s23, 16  ;;  %p1649_p3 = scmp.lt.s32.totalorder %s463_s23, %s2344_s1 }
 0x109   : >> { %p1647_p2 = scmp.ne.s32.totalorder %s463_s23, %s1646_s16  ;;  %p1650_p5 = scmp.lt.s32.totalorder %s2026_s29, %s1646_s16 }
 0x10b   : >> { %p1651_p6 = por %p1650_p5, %p1649_p3 }
 0x10d   : >> { %p1652_p7 = pnand %p1651_p6, %p1647_p2 }
 0x10f   : >> { %1655 = shalt.err (!%p1652_p7)  }
 0x110   : >> { %s1656_s21 = scalar_lea.vmem %s474_s7, 16  ;;  %p1661_p9 = scmp.lt.s32.totalorder %s474_s7, %s2032_s6 }
 0x111   : >> { %p1657_p10 = scmp.ne.s32.totalorder %s474_s7, %s1656_s21  ;;  %p1662_p12 = scmp.lt.s32.totalorder %s2035_s9, %s1656_s21 }
 0x113   : >> { %p1663_p11 = por %p1662_p12, %p1661_p9 }
 0x115   : >> { %p1664_p0 = pnand %p1663_p11, %p1657_p10 }
 0x117   : >> { %1667 = shalt.err (!%p1664_p0)  }
 0x118   : >> { %476 = dma.hbm_to_vmem [thread:$0]  %s463_s23, 16, %s474_s7, %s465_s20 }
 0x119   : >> { %s481_s12 = sand.u32 31, %s1308_s0  }
 0x11a   : >> { %s482_s4 = ssub.s32 0, %s481_s12 }
 0x11b   : >> { %s2484_s4 = smov (!%p478_p1, %s482_s4), %s481_s12 }
 0x11c   : >> { %p1310_p13 = scmp.lt.s32.totalorder %s2484_s4, 0  ;;  %s488_s24 = sadd.s32 32, %s2484_s4 }
 0x11e   : >> { %s2486_s24 = smov (!%p1310_p13, %s488_s24), %s2484_s4 }
 0x11f   : >> { %s490_s8 = scalar_lea.sflag [#allocation3], %s2486_s24 }
 0x120   : >> { %1832 = dma.done.wait %s490_s8, 16 }
 0x121   : >> { %1833 = vsyncadd %s490_s8, 4294967280  ;;  %p493_p2 = scmp.lt.s32.totalorder %s2079_s26, 0  ;;  %s494_s19 = ssub.s32 0, %s2079_s26 }
 0x122   : >> { %s1311_s28 = smin.u32 %s494_s19, %s2079_s26  ;;  %s1314_s7 = sshll.u32 %s2438_s10, 4 }
 0x123   : >> { %s496_s13 = sand.u32 31, %s1311_s28   ;;  %s1106_s5 = scalar_lea.vmem %s2127_s2, 36 [#allocation2] }
 0x124   : >> { %s497_s11 = ssub.s32 0, %s496_s13  ;;  %s516_s22 = sshll.u32 %s1106_s5, 4  ;;  %s517_s22 = int_to_ptr.vmem [resolvable:$true] %s516_s22 }
 0x125   : >> { %s2488_s11 = smov (!%p493_p2, %s497_s11), %s496_s13  ;;  %s520_s18 = sadd.s32 5, %s2048_s14 }
 0x126   : >> { %p1313_p1 = scmp.lt.s32.totalorder %s2488_s11, 0  ;;  %s503_s23 = sadd.s32 32, %s2488_s11 }
 0x127   : >> { %s506_s20 = scalar_lea.hbm %s2344_s1, %s1314_s7  ;;  %p521_p3 = scmp.lt.s32.totalorder %s520_s18, 0 }
 0x128   : >> { %s2490_s23 = smov (!%p1313_p1, %s503_s23), %s2488_s11  ;;  %s522_s16 = ssub.s32 0, %s520_s18 }
 0x129   : >> { %s1316_s27 = smin.u32 %s522_s16, %s520_s18  ;;  %s508_s26 = scalar_lea.sflag [#allocation3], %s2490_s23 }
 0x12a   : >> { %s1668_s17 = scalar_lea.hbm %s506_s20, 16  ;;  %p1671_p6 = scmp.lt.s32.totalorder %s506_s20, %s2344_s1 }
 0x12b   : >> { %p1669_p5 = scmp.ne.s32.totalorder %s506_s20, %s1668_s17  ;;  %p1672_p7 = scmp.lt.s32.totalorder %s2026_s29, %s1668_s17 }
 0x12d   : >> { %p1673_p10 = por %p1672_p7, %p1671_p6 }
 0x12f   : >> { %p1674_p9 = pnand %p1673_p10, %p1669_p5 }
 0x131   : >> { %1677 = shalt.err (!%p1674_p9)  }
 0x132   : >> { %s1678_s12 = scalar_lea.vmem %s517_s22, 16  ;;  %p1683_p11 = scmp.lt.s32.totalorder %s517_s22, %s2032_s6 }
 0x133   : >> { %p1679_p12 = scmp.ne.s32.totalorder %s517_s22, %s1678_s12  ;;  %p1684_p0 = scmp.lt.s32.totalorder %s2035_s9, %s1678_s12 }
 0x135   : >> { %p1685_p13 = por %p1684_p0, %p1683_p11 }
 0x137   : >> { %p1686_p2 = pnand %p1685_p13, %p1679_p12 }
 0x139   : >> { %1689 = shalt.err (!%p1686_p2)  }
 0x13a   : >> { %519 = dma.hbm_to_vmem [thread:$0]  %s506_s20, 16, %s517_s22, %s508_s26 }
 0x13b   : >> { %s524_s4 = sand.u32 31, %s1316_s27  }
 0x13c   : >> { %s525_s24 = ssub.s32 0, %s524_s4 }
 0x13d   : >> { %s2492_s24 = smov (!%p521_p3, %s525_s24), %s524_s4 }
 0x13e   : >> { %p1318_p1 = scmp.lt.s32.totalorder %s2492_s24, 0  ;;  %s531_s8 = sadd.s32 32, %s2492_s24 }
 0x140   : >> { %s2494_s8 = smov (!%p1318_p1, %s531_s8), %s2492_s24 }
 0x141   : >> { %s533_s19 = scalar_lea.sflag [#allocation3], %s2494_s8 }
 0x142   : >> { %1834 = dma.done.wait %s533_s19, 16 }
 0x143   : >> { %1835 = vsyncadd %s533_s19, 4294967280  ;;  %p536_p5 = scmp.lt.s32.totalorder %s2087_s30, 0  ;;  %s537_s28 = ssub.s32 0, %s2087_s30 }
 0x144   : >> { %s1319_s13 = smin.u32 %s537_s28, %s2087_s30  ;;  %s1322_s11 = sshll.u32 %s2442_s25, 4 }
 0x145   : >> { %s539_s7 = sand.u32 31, %s1319_s13   ;;  %s1113_s22 = scalar_lea.vmem %s2127_s2, 37 [#allocation2] }
 0x146   : >> { %s540_s5 = ssub.s32 0, %s539_s7  ;;  %s559_s18 = sshll.u32 %s1113_s22, 4  ;;  %s560_s18 = int_to_ptr.vmem [resolvable:$true] %s559_s18 }
 0x147   : >> { %s2496_s5 = smov (!%p536_p5, %s540_s5), %s539_s7  ;;  %s563_s23 = sadd.s32 6, %s2048_s14 }
 0x148   : >> { %p1321_p3 = scmp.lt.s32.totalorder %s2496_s5, 0  ;;  %s546_s3 = sadd.s32 32, %s2496_s5 }
 0x149   : >> { %s549_s16 = scalar_lea.hbm %s2344_s1, %s1322_s11  ;;  %p564_p6 = scmp.lt.s32.totalorder %s563_s23, 0 }
 0x14a   : >> { %s2498_s3 = smov (!%p1321_p3, %s546_s3), %s2496_s5  ;;  %s565_s27 = ssub.s32 0, %s563_s23 }
 0x14b   : >> { %s1324_s26 = smin.u32 %s565_s27, %s563_s23  ;;  %s551_s30 = scalar_lea.sflag [#allocation3], %s2498_s3 }
 0x14c   : >> { %s1690_s17 = scalar_lea.hbm %s549_s16, 16  ;;  %p1693_p10 = scmp.lt.s32.totalorder %s549_s16, %s2344_s1 }
 0x14d   : >> { %p1691_p7 = scmp.ne.s32.totalorder %s549_s16, %s1690_s17  ;;  %p1694_p9 = scmp.lt.s32.totalorder %s2026_s29, %s1690_s17 }
 0x14f   : >> { %p1695_p12 = por %p1694_p9, %p1693_p10 }
 0x151   : >> { %p1696_p11 = pnand %p1695_p12, %p1691_p7 }
 0x153   : >> { %1699 = shalt.err (!%p1696_p11)  }
 0x154   : >> { %s1700_s21 = scalar_lea.vmem %s560_s18, 16  ;;  %p1705_p13 = scmp.lt.s32.totalorder %s560_s18, %s2032_s6 }
 0x155   : >> { %p1701_p0 = scmp.ne.s32.totalorder %s560_s18, %s1700_s21  ;;  %p1706_p2 = scmp.lt.s32.totalorder %s2035_s9, %s1700_s21 }
 0x157   : >> { %p1707_p1 = por %p1706_p2, %p1705_p13 }
 0x159   : >> { %p1708_p5 = pnand %p1707_p1, %p1701_p0 }
 0x15b   : >> { %1711 = shalt.err (!%p1708_p5)  }
 0x15c   : >> { %562 = dma.hbm_to_vmem [thread:$0]  %s549_s16, 16, %s560_s18, %s551_s30 }
 0x15d   : >> { %s567_s12 = sand.u32 31, %s1324_s26  }
 0x15e   : >> { %s568_s4 = ssub.s32 0, %s567_s12 }
 0x15f   : >> { %s2500_s4 = smov (!%p564_p6, %s568_s4), %s567_s12 }
 0x160   : >> { %p1326_p3 = scmp.lt.s32.totalorder %s2500_s4, 0  ;;  %s574_s24 = sadd.s32 32, %s2500_s4 }
 0x162   : >> { %s2502_s24 = smov (!%p1326_p3, %s574_s24), %s2500_s4 }
 0x163   : >> { %s576_s8 = scalar_lea.sflag [#allocation3], %s2502_s24 }
 0x164   : >> { %1836 = dma.done.wait %s576_s8, 16 }
 0x165   : >> { %1837 = vsyncadd %s576_s8, 4294967280  ;;  %s2389_s19 = sld [smem:[#allocation61_spill]]  ;;  %s1330_s11 = sshll.u32 %s2446_s15, 4 }
 0x166   : >> { %s1120_s22 = scalar_lea.vmem %s2127_s2, 38 [#allocation2]  ;;  %s606_s23 = sadd.s32 7, %s2048_s14 }
 0x167   : >> { %s602_s18 = sshll.u32 %s1120_s22, 4  ;;  %s592_s16 = scalar_lea.hbm %s2344_s1, %s1330_s11  ;;  %s603_s18 = int_to_ptr.vmem [resolvable:$true] %s602_s18 }
 0x168   : >> { %p607_p10 = scmp.lt.s32.totalorder %s606_s23, 0  ;;  %s608_s27 = ssub.s32 0, %s606_s23 }
 0x169   : >> { %s1332_s26 = smin.u32 %s608_s27, %s606_s23  ;;  %s1712_s17 = scalar_lea.hbm %s592_s16, 16 }
 0x16a   : >> { %p1713_p9 = scmp.ne.s32.totalorder %s592_s16, %s1712_s17  ;;  %p1715_p12 = scmp.lt.s32.totalorder %s592_s16, %s2344_s1 }
 0x16b   : >> { %p579_p7 = scmp.lt.s32.totalorder %s2389_s19, 0  ;;  %s580_s28 = ssub.s32 0, %s2389_s19 }
 0x16c   : >> { %s1327_s13 = smin.u32 %s580_s28, %s2389_s19  ;;  %p1716_p11 = scmp.lt.s32.totalorder %s2026_s29, %s1712_s17 }
 0x16d   : >> { %s582_s7 = sand.u32 31, %s1327_s13  }
 0x16e   : >> { %s583_s5 = ssub.s32 0, %s582_s7  ;;  %p1717_p0 = por %p1716_p11, %p1715_p12 }
 0x16f   : >> { %s2504_s5 = smov (!%p579_p7, %s583_s5), %s582_s7 }
 0x170   : >> { %p1329_p6 = scmp.lt.s32.totalorder %s2504_s5, 0  ;;  %s589_s3 = sadd.s32 32, %s2504_s5 }
 0x171   : >> { %p1718_p13 = pnand %p1717_p0, %p1713_p9 }
 0x172   : >> { %s2506_s3 = smov (!%p1329_p6, %s589_s3), %s2504_s5 }
 0x173   : >> { %s594_s30 = scalar_lea.sflag [#allocation3], %s2506_s3 }
 0x174   : >> { %1721 = shalt.err (!%p1718_p13)  }
 0x175   : >> { %s1722_s10 = scalar_lea.vmem %s603_s18, 16  ;;  %p1727_p1 = scmp.lt.s32.totalorder %s603_s18, %s2032_s6 }
 0x176   : >> { %p1723_p2 = scmp.ne.s32.totalorder %s603_s18, %s1722_s10  ;;  %p1728_p5 = scmp.lt.s32.totalorder %s2035_s9, %s1722_s10 }
 0x178   : >> { %p1729_p3 = por %p1728_p5, %p1727_p1 }
 0x17a   : >> { %p1730_p7 = pnand %p1729_p3, %p1723_p2 }
 0x17c   : >> { %1733 = shalt.err (!%p1730_p7)  }
 0x17d   : >> { %605 = dma.hbm_to_vmem [thread:$0]  %s592_s16, 16, %s603_s18, %s594_s30 }
 0x17e   : >> { %s610_s21 = sand.u32 31, %s1332_s26  }
 0x17f   : >> { %s611_s12 = ssub.s32 0, %s610_s21 }
 0x180   : >> { %s2508_s12 = smov (!%p607_p10, %s611_s12), %s610_s21 }
 0x181   : >> { %p1334_p6 = scmp.lt.s32.totalorder %s2508_s12, 0  ;;  %s617_s4 = sadd.s32 32, %s2508_s12 }
 0x183   : >> { %s2510_s4 = smov (!%p1334_p6, %s617_s4), %s2508_s12 }
 0x184   : >> { %s619_s24 = scalar_lea.sflag [#allocation3], %s2510_s4 }
 0x185   : >> { %1838 = dma.done.wait %s619_s24, 16 }
 0x186   : >> { %1839 = vsyncadd %s619_s24, 4294967280  ;;  %s2390_s8 = sld [smem:[#allocation62_spill]]  ;;  %s1127_s22 = scalar_lea.vmem %s2127_s2, 39 [#allocation2] }
 0x187   : >> { %s2391_s19 = sld [smem:[#allocation63_spill]]  ;;  %s645_s18 = sshll.u32 %s1127_s22, 4  ;;  %s646_s18 = int_to_ptr.vmem [resolvable:$true] %s645_s18 }
 0x18c   : >> { %p622_p9 = scmp.lt.s32.totalorder %s2390_s8, 0  ;;  %s623_s28 = ssub.s32 0, %s2390_s8 }
 0x18d   : >> { %s1335_s13 = smin.u32 %s623_s28, %s2390_s8  ;;  %s1338_s11 = sshll.u32 %s2391_s19, 4 }
 0x18e   : >> { %s625_s7 = sand.u32 31, %s1335_s13   ;;  %s635_s20 = scalar_lea.hbm %s2344_s1, %s1338_s11 }
 0x18f   : >> { %s626_s5 = ssub.s32 0, %s625_s7  ;;  %s1734_s27 = scalar_lea.hbm %s635_s20, 16 }
 0x190   : >> { %s2512_s5 = smov (!%p622_p9, %s626_s5), %s625_s7  ;;  %p1735_p12 = scmp.ne.s32.totalorder %s635_s20, %s1734_s27 }
 0x191   : >> { %p1337_p10 = scmp.lt.s32.totalorder %s2512_s5, 0  ;;  %s632_s23 = sadd.s32 32, %s2512_s5 }
 0x192   : >> { %p1737_p11 = scmp.lt.s32.totalorder %s635_s20, %s2344_s1  ;;  %p1738_p0 = scmp.lt.s32.totalorder %s2026_s29, %s1734_s27 }
 0x193   : >> { %s2514_s23 = smov (!%p1337_p10, %s632_s23), %s2512_s5 }
 0x194   : >> { %s637_s16 = scalar_lea.sflag [#allocation3], %s2514_s23  ;;  %p1739_p13 = por %p1738_p0, %p1737_p11 }
 0x196   : >> { %p1740_p2 = pnand %p1739_p13, %p1735_p12 }
 0x198   : >> { %1743 = shalt.err (!%p1740_p2)  }
 0x199   : >> { %s1744_s17 = scalar_lea.vmem %s646_s18, 16  ;;  %p1749_p5 = scmp.lt.s32.totalorder %s646_s18, %s2032_s6 }
 0x19a   : >> { %p1745_p1 = scmp.ne.s32.totalorder %s646_s18, %s1744_s17  ;;  %p1750_p3 = scmp.lt.s32.totalorder %s2035_s9, %s1744_s17 }
 0x19c   : >> { %p1751_p7 = por %p1750_p3, %p1749_p5 }
 0x19e   : >> { %p1752_p6 = pnand %p1751_p7, %p1745_p1 }
 0x1a0   : >> { %1755 = shalt.err (!%p1752_p6)  }
 0x1a1   : >> { %648 = dma.hbm_to_vmem [thread:$0]  %s635_s20, 16, %s646_s18, %s637_s16 }
 0x1a2   : >> { %s2392_s15 = sld [smem:[#allocation59_spill]]  ;;  %s651_s25 = scalar_lea.vmem [#allocation6], %s2048_s14  ;;  %v650_v1 = vld [vmem:[%s2127_s2] sm:$0xff] }
 0x1a3   : >> { %v652_v0 = vld [vmem:[%s651_s25] sm:$0xff]  ;;  %s2393_s21 = sld [smem:[#allocation60_spill]] }
 0x1a4   : >> { %v653_v2 = vadd.f32 %v652_v0, %v650_v1 }
 0x1a8   : >> { %s654_s10 = scalar_lea.vmem %s2392_s15, %s2048_s14 }
 0x1a9   : >> { %655 = vst [vmem:[%s654_s10] sm:$0xff] %v653_v2  ;;  %s192_s11 = sadd.s32 1, %s2393_s21  }
 0x1aa   : >> { %p189_p9 = scmp.ge.s32.totalorder %s192_s11, 12  }
 0x1ab   : > { %s2259_s12 = smov (%p189_p9), 0  }
 0x1ac   : > { %191 = sbr.rel (!%p189_p9) target bundleno = 98 (0x62), region = 210 }
 0x1b1 LB: >> { %s2265_s4 = sshll.u32 %s1894_s12, 3  ;;  %s1894_s12 = sphi %s2259_s12, %s661_s12  }
 0x1b2   : >> { %s2268_s14 = sadd.s32 96, %s2265_s4 }
 0x1b3   : >> { %p664_p10 = scmp.lt.s32.totalorder %s2268_s14, 0  ;;  %s665_s2 = ssub.s32 0, %s2268_s14 }
 0x1b4   : >> { %s1341_s24 = smin.u32 %s2268_s14, %s665_s2 }
 0x1b5   : >> { %s667_s8 = sand.u32 31, %s1341_s24  }
 0x1b6   : >> { %s668_s29 = ssub.s32 0, %s667_s8 }
 0x1b7   : >> { %s2516_s29 = smov (!%p664_p10, %s668_s29), %s667_s8 }
 0x1b8   : >> { %p1343_p12 = scmp.lt.s32.totalorder %s2516_s29, 0  ;;  %s674_s6 = sadd.s32 32, %s2516_s29 }
 0x1ba   : >> { %s2518_s6 = smov (!%p1343_p12, %s674_s6), %s2516_s29 }
 0x1bb   : >> { %s676_s9 = scalar_lea.sflag [#allocation3], %s2518_s6 }
 0x1bc   : >> { %1840 = dma.done.wait %s676_s9, 16 }
 0x1bd   : >> { %1841 = vsyncadd %s676_s9, 4294967280  ;;  %s679_s19 = sadd.s32 1, %s2268_s14 }
 0x1be   : >> { %p680_p11 = scmp.lt.s32.totalorder %s679_s19, 0  ;;  %s681_s28 = ssub.s32 0, %s679_s19 }
 0x1bf   : >> { %s1344_s13 = smin.u32 %s681_s28, %s679_s19 }
 0x1c0   : >> { %s683_s7 = sand.u32 31, %s1344_s13  }
 0x1c1   : >> { %s684_s11 = ssub.s32 0, %s683_s7 }
 0x1c2   : >> { %s2520_s11 = smov (!%p680_p11, %s684_s11), %s683_s7 }
 0x1c3   : >> { %p1346_p0 = scmp.lt.s32.totalorder %s2520_s11, 0  ;;  %s690_s5 = sadd.s32 32, %s2520_s11 }
 0x1c5   : >> { %s2522_s5 = smov (!%p1346_p0, %s690_s5), %s2520_s11 }
 0x1c6   : >> { %s692_s22 = scalar_lea.sflag [#allocation3], %s2522_s5 }
 0x1c7   : >> { %1842 = dma.done.wait %s692_s22, 16 }
 0x1c8   : >> { %1843 = vsyncadd %s692_s22, 4294967280  ;;  %s695_s18 = sadd.s32 2, %s2268_s14 }
 0x1c9   : >> { %p696_p13 = scmp.lt.s32.totalorder %s695_s18, 0  ;;  %s697_s23 = ssub.s32 0, %s695_s18 }
 0x1ca   : >> { %s1347_s3 = smin.u32 %s697_s23, %s695_s18 }
 0x1cb   : >> { %s699_s0 = sand.u32 31, %s1347_s3  }
 0x1cc   : >> { %s700_s20 = ssub.s32 0, %s699_s0 }
 0x1cd   : >> { %s2524_s20 = smov (!%p696_p13, %s700_s20), %s699_s0 }
 0x1ce   : >> { %p1349_p2 = scmp.lt.s32.totalorder %s2524_s20, 0  ;;  %s706_s16 = sadd.s32 32, %s2524_s20 }
 0x1d0   : >> { %s2526_s16 = smov (!%p1349_p2, %s706_s16), %s2524_s20 }
 0x1d1   : >> { %s708_s27 = scalar_lea.sflag [#allocation3], %s2526_s16 }
 0x1d2   : >> { %1844 = dma.done.wait %s708_s27, 16 }
 0x1d3   : >> { %1845 = vsyncadd %s708_s27, 4294967280  ;;  %s711_s26 = sadd.s32 3, %s2268_s14 }
 0x1d4   : >> { %p712_p1 = scmp.lt.s32.totalorder %s711_s26, 0  ;;  %s713_s30 = ssub.s32 0, %s711_s26 }
 0x1d5   : >> { %s1350_s17 = smin.u32 %s713_s30, %s711_s26 }
 0x1d6   : >> { %s715_s15 = sand.u32 31, %s1350_s17  }
 0x1d7   : >> { %s716_s25 = ssub.s32 0, %s715_s15 }
 0x1d8   : >> { %s2528_s25 = smov (!%p712_p1, %s716_s25), %s715_s15 }
 0x1d9   : >> { %p1352_p5 = scmp.lt.s32.totalorder %s2528_s25, 0  ;;  %s722_s10 = sadd.s32 32, %s2528_s25 }
 0x1db   : >> { %s2530_s10 = smov (!%p1352_p5, %s722_s10), %s2528_s25 }
 0x1dc   : >> { %s724_s21 = scalar_lea.sflag [#allocation3], %s2530_s10 }
 0x1dd   : >> { %1846 = dma.done.wait %s724_s21, 16 }
 0x1de   : >> { %1847 = vsyncadd %s724_s21, 4294967280  ;;  %s727_s2 = sadd.s32 4, %s2268_s14 }
 0x1df   : >> { %p728_p3 = scmp.lt.s32.totalorder %s727_s2, 0  ;;  %s729_s24 = ssub.s32 0, %s727_s2 }
 0x1e0   : >> { %s1353_s8 = smin.u32 %s729_s24, %s727_s2 }
 0x1e1   : >> { %s731_s29 = sand.u32 31, %s1353_s8  }
 0x1e2   : >> { %s732_s6 = ssub.s32 0, %s731_s29 }
 0x1e3   : >> { %s2532_s6 = smov (!%p728_p3, %s732_s6), %s731_s29 }
 0x1e4   : >> { %p1355_p7 = scmp.lt.s32.totalorder %s2532_s6, 0  ;;  %s738_s9 = sadd.s32 32, %s2532_s6 }
 0x1e6   : >> { %s2534_s9 = smov (!%p1355_p7, %s738_s9), %s2532_s6 }
 0x1e7   : >> { %s740_s19 = scalar_lea.sflag [#allocation3], %s2534_s9 }
 0x1e8   : >> { %1848 = dma.done.wait %s740_s19, 16 }
 0x1e9   : >> { %1849 = vsyncadd %s740_s19, 4294967280  ;;  %s743_s28 = sadd.s32 5, %s2268_s14 }
 0x1ea   : >> { %p744_p6 = scmp.lt.s32.totalorder %s743_s28, 0  ;;  %s745_s13 = ssub.s32 0, %s743_s28 }
 0x1eb   : >> { %s1356_s7 = smin.u32 %s745_s13, %s743_s28 }
 0x1ec   : >> { %s747_s11 = sand.u32 31, %s1356_s7  }
 0x1ed   : >> { %s748_s5 = ssub.s32 0, %s747_s11 }
 0x1ee   : >> { %s2536_s5 = smov (!%p744_p6, %s748_s5), %s747_s11 }
 0x1ef   : >> { %p1358_p9 = scmp.lt.s32.totalorder %s2536_s5, 0  ;;  %s754_s22 = sadd.s32 32, %s2536_s5 }
 0x1f1   : >> { %s2538_s22 = smov (!%p1358_p9, %s754_s22), %s2536_s5 }
 0x1f2   : >> { %s756_s18 = scalar_lea.sflag [#allocation3], %s2538_s22 }
 0x1f3   : >> { %1850 = dma.done.wait %s756_s18, 16 }
 0x1f4   : >> { %1851 = vsyncadd %s756_s18, 4294967280  ;;  %s759_s23 = sadd.s32 6, %s2268_s14 }
 0x1f5   : >> { %p760_p10 = scmp.lt.s32.totalorder %s759_s23, 0  ;;  %s761_s3 = ssub.s32 0, %s759_s23 }
 0x1f6   : >> { %s1359_s0 = smin.u32 %s761_s3, %s759_s23 }
 0x1f7   : >> { %s763_s20 = sand.u32 31, %s1359_s0  }
 0x1f8   : >> { %s764_s16 = ssub.s32 0, %s763_s20 }
 0x1f9   : >> { %s2540_s16 = smov (!%p760_p10, %s764_s16), %s763_s20 }
 0x1fa   : >> { %p1361_p12 = scmp.lt.s32.totalorder %s2540_s16, 0  ;;  %s770_s27 = sadd.s32 32, %s2540_s16 }
 0x1fc   : >> { %s2542_s27 = smov (!%p1361_p12, %s770_s27), %s2540_s16 }
 0x1fd   : >> { %s772_s26 = scalar_lea.sflag [#allocation3], %s2542_s27 }
 0x1fe   : >> { %1852 = dma.done.wait %s772_s26, 16 }
 0x1ff   : >> { %1853 = vsyncadd %s772_s26, 4294967280  ;;  %s775_s30 = sadd.s32 7, %s2268_s14 }
 0x200   : >> { %p776_p11 = scmp.lt.s32.totalorder %s775_s30, 0  ;;  %s777_s17 = ssub.s32 0, %s775_s30 }
 0x201   : >> { %s1362_s15 = smin.u32 %s777_s17, %s775_s30 }
 0x202   : >> { %s779_s25 = sand.u32 31, %s1362_s15  }
 0x203   : >> { %s780_s10 = ssub.s32 0, %s779_s25 }
 0x204   : >> { %s2544_s10 = smov (!%p776_p11, %s780_s10), %s779_s25 }
 0x205   : >> { %p1364_p0 = scmp.lt.s32.totalorder %s2544_s10, 0  ;;  %s786_s21 = sadd.s32 32, %s2544_s10 }
 0x207   : >> { %s2546_s21 = smov (!%p1364_p0, %s786_s21), %s2544_s10 }
 0x208   : >> { %s788_s2 = scalar_lea.sflag [#allocation3], %s2546_s21 }
 0x209   : >> { %1854 = dma.done.wait %s788_s2, 16 }
 0x20a   : >> { %1855 = vsyncadd %s788_s2, 4294967280  ;;  %s2394_s24 = sld [smem:[#allocation59_spill]]  ;;  %s1144_s8 = scalar_lea.vmem [#allocation2], %s2265_s4 }
 0x20b   : >> { %v1366_v3 = vld [vmem:[%s1144_s8 + $0x60] sm:$0xff]  ;;  %s1147_s29 = scalar_lea.vmem [#allocation6], %s2265_s4  ;;  %s661_s12 = sadd.s32 1, %s1894_s12  }
 0x20c   : >> { %v1368_v4 = vld [vmem:[%s1147_s29 + $0x60] sm:$0xff]  ;;  %p658_p13 = scmp.ge.s32.totalorder %s661_s12, 4  }
 0x20d   : >> { %v795_v5 = vadd.f32 %v1368_v4, %v1366_v3  ;;  %s2395_s6 = sld [smem:[#allocation52_spill]] (%p658_p13)  ;;  %s1901_s3 = smov (%p658_p13), [#allocation9]  }
 0x20e   : > { %660 = sbr.rel (!%p658_p13) target bundleno = 433 (0x1b1), region = 221  ;;  %s2396_s9 = sld [smem:[#allocation59_spill]] (%p658_p13) }
 0x20f   : > { %s2397_s19 = sld [smem:[#allocation50_spill]] (%p658_p13)  ;;  %s1760_s0 = sshll.u32 (%p658_p13), %s1901_s3, 4  ;;  %s1761_s0 = int_to_ptr.vmem [resolvable:$false] %s1760_s0 }
 0x210   : >> { %s1150_s14 = scalar_lea.vmem %s2394_s24, %s2265_s4  ;;  %s2399_s5 = sld [smem:[#allocation65_spill]] (%p658_p13) }
 0x211   : >> { %1370 = vst [vmem:[%s1150_s14 + $0x60] sm:$0xff] %v795_v5  ;;  %s1762_s20 = scalar_lea.vmem (%p658_p13), %s1761_s0, 4096 }
 0x213   : > { %s1428_s13 = sshll.u32 %s2395_s6, 11 }
 0x214   : > { %s814_s18 = sshll.u32 %s2396_s9, 4  ;;  %s2294_s18 = int_to_ptr.vmem [resolvable:$true] %s814_s18 }
 0x215   : > { %s2400_s4 = sand.u32 1, %s2397_s19   ;;  %s1756_s12 = scalar_lea.vmem %s2294_s18, 2048 }
 0x216   : > { %s2291_s22 = scalar_lea.hbm %s2399_s5, %s1428_s13  ;;  %s2298_s23 = scalar_lea.sflag [#allocation8], %s2400_s4 }
 0x217   : > { %p1757_p2 = scmp.ne.s32.totalorder %s2294_s18, %s1756_s12  ;;  %p1763_p3 = scmp.lt.s32.totalorder %s2294_s18, %s1761_s0 }
 0x218   : > { %p1764_p7 = scmp.lt.s32.totalorder %s1762_s20, %s1756_s12 }
 0x219   : > { %p1758_p1 = pnand %p1757_p2, %p1967_p4 }
 0x21a   : > { %p1765_p6 = por %p1764_p7, %p1763_p3 }
 0x21b   : > { %p1759_p5 = pneg %p1758_p1 }
 0x21d   : > { %p1766_p9 = pnand %p1765_p6, %p1759_p5 }
 0x21f   : > { %1769 = shalt.err (!%p1766_p9)
}
 0x220   : > { %s1770_s16 = scalar_lea.hbm %s2291_s22, 2048  ;;  %s1774_s30 = scalar_lea.hbm %s2399_s5, 4096 }
 0x221   : > { %p1771_p10 = scmp.ne.s32.totalorder %s2291_s22, %s1770_s16  ;;  %p1775_p0 = scmp.lt.s32.totalorder %s2291_s22, %s2399_s5 }
 0x222   : > { %p1776_p13 = scmp.lt.s32.totalorder %s1774_s30, %s1770_s16 }
 0x223   : > { %p1772_p12 = pnand %p1771_p10, %p1967_p4 }
 0x224   : > { %p1777_p2 = por %p1776_p13, %p1775_p0 }
 0x225   : > { %p1773_p11 = pneg %p1772_p12 }
 0x227   : > { %p1778_p1 = pnand %p1777_p2, %p1773_p11 }
 0x229   : > { %1781 = shalt.err (!%p1778_p1)
}
 0x22a   : > { %s1902_s25 = smov 128   ;;  %s1903_s10 = smov 8  }
 0x22b   : > { %1433 = dma.vmem_to_hbm [thread:$0]  (%p1967_p4), %s2294_s18, 2048, %s2291_s22, %s2298_s23, %s1902_s25, %s1902_s25, %s1903_s10  }
 0x22c PF: > { %s2401_s21 = sld [smem:[#allocation54_spill]] }
 0x22d   : > { %s2402_s2 = sld [smem:[#allocation49_spill]] }
 0x232   : > { %p1445_p5 = scmp.ge.s32.totalorder %s2401_s21, 2 }
 0x233   : > { %s829_s8 = sand.u32 1, %s2402_s2  }
 0x234   : > { %p1440_p3 = pnand %p1445_p5, %p1974_p8  ;;  %s830_s29 = scalar_lea.sflag [#allocation8], %s829_s8 }
 0x236   : > { %p1441_p7 = pneg %p1440_p3 }
 0x238   : > { %1857 = dma.done.wait (%p1441_p7), %s830_s29, 2048  }
 0x239   : > { %1859 = vsyncadd (%p1441_p7), %s830_s29, 4294965248  ;;  %s21_s20 = sadd.s32 1, %s2401_s21   ;;  %s2404_s15 = sld [smem:[#allocation50_spill]] }
 0x23a   : > { %p18_p6 = scmp.ge.s32.totalorder %s21_s20, 4   ;;  %s2405_s16 = sld [smem:[#allocation51_spill]] }
 0x23b   : > { %s2406_s17 = sld [smem:[#allocation58_spill]] }
 0x23c   : > { %s2407_s18 = sld [smem:[#allocation53_spill]]  ;;  %20 = sbr.rel (!%p18_p6) target bundleno = 12 (0xc), region = 232 }
 0x23d   : > { %s2408_s19 = sld [smem:[#allocation55_spill]] }
 0x241   :  { %835 = vsyncpa [#allocation7], 1 }
 0x242   :  { %837 = vsyncpa [#allocation7 + $0x1], 1 }
 0x243   :  { %838 = vsyncpa [#allocation8], 1 }
 0x244   :  { %840 = vsyncpa [#allocation8 + $0x1], 1 }
 0x245   :  { %841 = vsyncmov [#allocation3] }
 0x248   :  { %s842_s14 = vpop.sfrf %841 }
 0x249   :  { %p1376_p4 = scmp.ne.s32.totalorder %s842_s14, 0 }
 0x24b   :  { %846 = shalt.err (%p1376_p4)  }
 0x24c   :  { %848 = vsyncmov [#allocation3 + $0x1] }
 0x24f   :  { %s849_s6 = vpop.sfrf %848 }
 0x250   :  { %p1377_p8 = scmp.ne.s32.totalorder %s849_s6, 0 }
 0x252   :  { %853 = shalt.err (%p1377_p8)  }
 0x253   :  { %855 = vsyncmov [#allocation3 + $0x2] }
 0x256   :  { %s856_s9 = vpop.sfrf %855 }
 0x257   :  { %p1378_p9 = scmp.ne.s32.totalorder %s856_s9, 0 }
 0x259   :  { %860 = shalt.err (%p1378_p9)  }
 0x25a   :  { %862 = vsyncmov [#allocation3 + $0x3] }
 0x25d   :  { %s863_s28 = vpop.sfrf %862 }
 0x25e   :  { %p1379_p10 = scmp.ne.s32.totalorder %s863_s28, 0 }
 0x260   :  { %867 = shalt.err (%p1379_p10)  }
 0x261   :  { %869 = vsyncmov [#allocation3 + $0x4] }
 0x264   :  { %s870_s1 = vpop.sfrf %869 }
 0x265   :  { %p1380_p12 = scmp.ne.s32.totalorder %s870_s1, 0 }
 0x267   :  { %874 = shalt.err (%p1380_p12)  }
 0x268   :  { %876 = vsyncmov [#allocation3 + $0x5] }
 0x26b   :  { %s877_s19 = vpop.sfrf %876 }
 0x26c   :  { %p1381_p11 = scmp.ne.s32.totalorder %s877_s19, 0 }
 0x26e   :  { %881 = shalt.err (%p1381_p11)  }
 0x26f   :  { %883 = vsyncmov [#allocation3 + $0x6] }
 0x272   :  { %s884_s13 = vpop.sfrf %883 }
 0x273   :  { %p1382_p0 = scmp.ne.s32.totalorder %s884_s13, 0 }
 0x275   :  { %888 = shalt.err (%p1382_p0)  }
 0x276   :  { %890 = vsyncmov [#allocation3 + $0x7] }
 0x279   :  { %s891_s7 = vpop.sfrf %890 }
 0x27a   :  { %p1383_p13 = scmp.ne.s32.totalorder %s891_s7, 0 }
 0x27c   :  { %895 = shalt.err (%p1383_p13)  }
 0x27d   :  { %897 = vsyncmov [#allocation3 + $0x8] }
 0x280   :  { %s898_s11 = vpop.sfrf %897 }
 0x281   :  { %p1384_p2 = scmp.ne.s32.totalorder %s898_s11, 0 }
 0x283   :  { %902 = shalt.err (%p1384_p2)  }
 0x284   :  { %904 = vsyncmov [#allocation3 + $0x9] }
 0x287   :  { %s905_s5 = vpop.sfrf %904 }
 0x288   :  { %p1385_p1 = scmp.ne.s32.totalorder %s905_s5, 0 }
 0x28a   :  { %909 = shalt.err (%p1385_p1)  }
 0x28b   :  { %911 = vsyncmov [#allocation3 + $0xa] }
 0x28e   :  { %s912_s22 = vpop.sfrf %911 }
 0x28f   :  { %p1386_p5 = scmp.ne.s32.totalorder %s912_s22, 0 }
 0x291   :  { %916 = shalt.err (%p1386_p5)  }
 0x292   :  { %918 = vsyncmov [#allocation3 + $0xb] }
 0x295   :  { %s919_s18 = vpop.sfrf %918 }
 0x296   :  { %p1387_p3 = scmp.ne.s32.totalorder %s919_s18, 0 }
 0x298   :  { %923 = shalt.err (%p1387_p3)  }
 0x299   :  { %925 = vsyncmov [#allocation3 + $0xc] }
 0x29c   :  { %s926_s4 = vpop.sfrf %925 }
 0x29d   :  { %p1388_p7 = scmp.ne.s32.totalorder %s926_s4, 0 }
 0x29f   :  { %930 = shalt.err (%p1388_p7)  }
 0x2a0   :  { %932 = vsyncmov [#allocation3 + $0xd] }
 0x2a3   :  { %s933_s23 = vpop.sfrf %932 }
 0x2a4   :  { %p1389_p6 = scmp.ne.s32.totalorder %s933_s23, 0 }
 0x2a6   :  { %937 = shalt.err (%p1389_p6)  }
 0x2a7   :  { %939 = vsyncmov [#allocation3 + $0xe] }
 0x2aa   :  { %s940_s12 = vpop.sfrf %939 }
 0x2ab   :  { %p1390_p4 = scmp.ne.s32.totalorder %s940_s12, 0 }
 0x2ad   :  { %944 = shalt.err (%p1390_p4)  }
 0x2ae   :  { %946 = vsyncmov [#allocation3 + $0xf] }
 0x2b1   :  { %s947_s3 = vpop.sfrf %946 }
 0x2b2   :  { %p1391_p8 = scmp.ne.s32.totalorder %s947_s3, 0 }
 0x2b4   :  { %951 = shalt.err (%p1391_p8)  }
 0x2b5   :  { %953 = vsyncmov [#allocation3 + $0x10] }
 0x2b8   :  { %s954_s0 = vpop.sfrf %953 }
 0x2b9   :  { %p1392_p9 = scmp.ne.s32.totalorder %s954_s0, 0 }
 0x2bb   :  { %958 = shalt.err (%p1392_p9)  }
 0x2bc   :  { %960 = vsyncmov [#allocation3 + $0x11] }
 0x2bf   :  { %s961_s20 = vpop.sfrf %960 }
 0x2c0   :  { %p1393_p10 = scmp.ne.s32.totalorder %s961_s20, 0 }
 0x2c2   :  { %965 = shalt.err (%p1393_p10)  }
 0x2c3   :  { %967 = vsyncmov [#allocation3 + $0x12] }
 0x2c6   :  { %s968_s16 = vpop.sfrf %967 }
 0x2c7   :  { %p1394_p12 = scmp.ne.s32.totalorder %s968_s16, 0 }
 0x2c9   :  { %972 = shalt.err (%p1394_p12)  }
 0x2ca   :  { %974 = vsyncmov [#allocation3 + $0x13] }
 0x2cd   :  { %s975_s27 = vpop.sfrf %974 }
 0x2ce   :  { %p1395_p11 = scmp.ne.s32.totalorder %s975_s27, 0 }
 0x2d0   :  { %979 = shalt.err (%p1395_p11)  }
 0x2d1   :  { %981 = vsyncmov [#allocation3 + $0x14] }
 0x2d4   :  { %s982_s26 = vpop.sfrf %981 }
 0x2d5   :  { %p1396_p0 = scmp.ne.s32.totalorder %s982_s26, 0 }
 0x2d7   :  { %986 = shalt.err (%p1396_p0)  }
 0x2d8   :  { %988 = vsyncmov [#allocation3 + $0x15] }
 0x2db   :  { %s989_s30 = vpop.sfrf %988 }
 0x2dc   :  { %p1397_p13 = scmp.ne.s32.totalorder %s989_s30, 0 }
 0x2de   :  { %993 = shalt.err (%p1397_p13)  }
 0x2df   :  { %995 = vsyncmov [#allocation3 + $0x16] }
 0x2e2   :  { %s996_s17 = vpop.sfrf %995 }
 0x2e3   :  { %p1398_p2 = scmp.ne.s32.totalorder %s996_s17, 0 }
 0x2e5   :  { %1000 = shalt.err (%p1398_p2)  }
 0x2e6   :  { %1002 = vsyncmov [#allocation3 + $0x17] }
 0x2e9   :  { %s1003_s15 = vpop.sfrf %1002 }
 0x2ea   :  { %p1399_p1 = scmp.ne.s32.totalorder %s1003_s15, 0 }
 0x2ec   :  { %1007 = shalt.err (%p1399_p1)  }
 0x2ed   :  { %1009 = vsyncmov [#allocation3 + $0x18] }
 0x2f0   :  { %s1010_s25 = vpop.sfrf %1009 }
 0x2f1   :  { %p1400_p5 = scmp.ne.s32.totalorder %s1010_s25, 0 }
 0x2f3   :  { %1014 = shalt.err (%p1400_p5)  }
 0x2f4   :  { %1016 = vsyncmov [#allocation3 + $0x19] }
 0x2f7   :  { %s1017_s10 = vpop.sfrf %1016 }
 0x2f8   :  { %p1401_p3 = scmp.ne.s32.totalorder %s1017_s10, 0 }
 0x2fa   :  { %1021 = shalt.err (%p1401_p3)  }
 0x2fb   :  { %1023 = vsyncmov [#allocation3 + $0x1a] }
 0x2fe   :  { %s1024_s21 = vpop.sfrf %1023 }
 0x2ff   :  { %p1402_p7 = scmp.ne.s32.totalorder %s1024_s21, 0 }
 0x301   :  { %1028 = shalt.err (%p1402_p7)  }
 0x302   :  { %1030 = vsyncmov [#allocation3 + $0x1b] }
 0x305   :  { %s1031_s2 = vpop.sfrf %1030 }
 0x306   :  { %p1403_p6 = scmp.ne.s32.totalorder %s1031_s2, 0 }
 0x308   :  { %1035 = shalt.err (%p1403_p6)  }
 0x309   :  { %1037 = vsyncmov [#allocation3 + $0x1c] }
 0x30c   :  { %s1038_s24 = vpop.sfrf %1037 }
 0x30d   :  { %p1404_p4 = scmp.ne.s32.totalorder %s1038_s24, 0 }
 0x30f   :  { %1042 = shalt.err (%p1404_p4)  }
 0x310   :  { %1044 = vsyncmov [#allocation3 + $0x1d] }
 0x313   :  { %s1045_s8 = vpop.sfrf %1044 }
 0x314   :  { %p1405_p8 = scmp.ne.s32.totalorder %s1045_s8, 0 }
 0x316   :  { %1049 = shalt.err (%p1405_p8)  }
 0x317   :  { %1051 = vsyncmov [#allocation3 + $0x1e] }
 0x31a   :  { %s1052_s29 = vpop.sfrf %1051 }
 0x31b   :  { %p1406_p9 = scmp.ne.s32.totalorder %s1052_s29, 0 }
 0x31d   :  { %1056 = shalt.err (%p1406_p9)  }
 0x31e   :  { %1058 = vsyncmov [#allocation3 + $0x1f] }
 0x321   :  { %s1059_s14 = vpop.sfrf %1058 }
 0x322   :  { %p1407_p10 = scmp.ne.s32.totalorder %s1059_s14, 0 }
 0x324   :  { %1063 = shalt.err (%p1407_p10)  }

</bundles_post_ra>
